<compile_context>
chip_gen: v7x
topology: tpu7x:2x2x1
jax: 0.10.0
libtpu: 0.0.40
codegen_flags: <defaults>
</compile_context>

<pallas_src>
import numpy as np

import jax
import jax.numpy as jnp
from jax.experimental import pallas as pl
from jax.experimental.pallas import tpu as pltpu


def _round_up(x, m):
    return (x + m - 1) // m * m


def _relu_rb_impl(x_nchw, w1_oihw, b1, w2_oihw, b2):
    N, Cin, H, W = x_nchw.shape
    Cmid = w1_oihw.shape[0]
    Cout = w2_oihw.shape[0]
    assert Cout == Cin, "residual add requires outchannels == inchannels"
    assert w1_oihw.shape == (Cmid, Cin, 3, 3)
    assert w2_oihw.shape == (Cout, Cmid, 3, 3)

    # Padded-frame geometry (flat spatial, width WS >= W + 4).
    WS = _round_up(W + 4, 8)          # frame width (2-px halo each side + pad)
    J1 = (H + 2) * WS                 # conv1 output length (incl. 1-px row halo)
    J2 = H * WS                       # conv2 / residual / output length
    Lp = (H + 5) * WS                 # input slab length (+1 zero frame row tail)
    TAIL = 128                        # deterministic zero tail read by conv2 taps

    # ---- HBM-side prep: one zero-pad, free reshapes, folded weights ---------
    x = x_nchw.astype(jnp.float32)
    xs = jnp.pad(x, ((0, 0), (0, 0), (2, 3), (2, WS - W - 2))).reshape(N, Cin, Lp)

    # OIHW -> (out, tap, in) folded, bf16 for the MXU.
    w1t = jnp.transpose(w1_oihw, (0, 2, 3, 1)).reshape(Cmid, 9 * Cin)
    w1t = w1t.astype(jnp.bfloat16)
    w2t = jnp.transpose(w2_oihw, (0, 2, 3, 1)).reshape(Cout, 9 * Cmid)
    w2t = w2t.astype(jnp.bfloat16)
    b1r = b1.reshape(Cmid, 1).astype(jnp.float32)
    b2r = b2.reshape(Cout, 1).astype(jnp.float32)

    # 0/1 validity mask over the y1 frame: zero where conv1's SAME output does
    # not exist (image row -1/H, col -1/W and the width-padding columns).
    row_ok = (jnp.arange(H + 2) >= 1) & (jnp.arange(H + 2) <= H)
    col_ok = (jnp.arange(WS) >= 1) & (jnp.arange(WS) <= W)
    mask = (row_ok[:, None] & col_ok[None, :]).astype(jnp.float32).reshape(1, J1)

    def kernel(xs_ref, w1t_ref, b1_ref, w2t_ref, b2_ref, m_ref, o_ref,
               p1_ref, y1_ref):
        # xs_ref : (Cin, Lp)        f32  flattened padded input frame
        # w1t_ref: (Cmid, 9*Cin)    bf16
        # b1_ref : (Cmid, 1)        f32
        # w2t_ref: (Cout, 9*Cmid)   bf16
        # b2_ref : (Cout, 1)        f32
        # m_ref  : (1, J1)          f32  y1 halo/pad validity mask
        # o_ref  : (Cout, J2)       f32  lane-dense output frame
        # p1_ref : (9*Cin, J1)      bf16 conv1 im2col
        # y1_ref : (Cmid, J1+TAIL)  bf16 relu(conv1) (+ zero tail)

        # conv1 im2col: each tap is a flat lane offset; relu fused into the
        # operand cast (relu in f32, cast to bf16 at the matmul operand).
        for t in range(9):
            dy, dx = divmod(t, 3)
            off = dy * WS + dx
            p1_ref[t * Cin:(t + 1) * Cin, :] = jnp.maximum(
                xs_ref[:, off:off + J1], 0.0).astype(jnp.bfloat16)

        # conv1: one (Cmid, 9*Cin) @ (9*Cin, J1) matmul; bias + relu + halo
        # mask fused into the single full-width y1 store.
        y1 = jnp.dot(w1t_ref[...], p1_ref[...],
                     preferred_element_type=jnp.float32)
        y1 = jnp.maximum(y1 + b1_ref[...], 0.0) * m_ref[...]
        y1_ref[:, 0:J1] = y1.astype(jnp.bfloat16)
        # A couple of columns past J1 are read by the largest conv2 tap offset
        # (only for width-padding output columns the wrapper discards); keep
        # them deterministic with one small zero store.
        y1_ref[:, J1:J1 + TAIL] = jnp.zeros((Cmid, TAIL), jnp.bfloat16)

        # conv2 (transposed: Cout on sublanes, flat spatial on lanes): the 9
        # taps are free flat offsets into y1, accumulated in registers; bias
        # is the accumulator init; the f32 un-relu'd residual is fused into
        # the single lane-dense output store.
        acc = b2_ref[...] + jnp.dot(w2t_ref[:, 0:Cmid], y1_ref[:, 0:J2],
                                    preferred_element_type=jnp.float32)
        for t in range(1, 9):
            dy, dx = divmod(t, 3)
            off = dy * WS + dx
            acc = acc + jnp.dot(w2t_ref[:, t * Cmid:(t + 1) * Cmid],
                                y1_ref[:, off:off + J2],
                                preferred_element_type=jnp.float32)
        o_ref[...] = acc + xs_ref[:, 2 * WS + 2:2 * WS + 2 + J2]

    # VMEM budget (blocks are double-buffered) + generous headroom.
    blk_bytes = (Cin * Lp * 4 + Cout * J2 * 4
                 + Cmid * 9 * Cin * 2 + Cout * 9 * Cmid * 2
                 + (Cmid + Cout) * 4 + J1 * 4)
    scratch_bytes = 9 * Cin * J1 * 2 + Cmid * (J1 + TAIL) * 2
    vmem_limit = int(min(48 * 1024 * 1024,
                         max(4 * 1024 * 1024,
                             4 * (2 * blk_bytes + scratch_bytes))))

    flops = 2 * N * (Cmid * 9 * Cin * J1 + 9 * Cout * Cmid * J2)
    bytes_accessed = int(xs.size * 4 + N * Cout * J2 * 4
                         + (w1t.size + w2t.size) * 2
                         + (b1r.size + b2r.size + mask.size) * 4)

    out = pl.pallas_call(
        kernel,
        out_shape=jax.ShapeDtypeStruct((N, Cout, J2), jnp.float32),
        grid_spec=pltpu.PrefetchScalarGridSpec(
            num_scalar_prefetch=0,
            grid=(N,),
            in_specs=[
                pl.BlockSpec((None, Cin, Lp), lambda n: (n, 0, 0)),
                pl.BlockSpec((Cmid, 9 * Cin), lambda n: (0, 0)),
                pl.BlockSpec((Cmid, 1), lambda n: (0, 0)),
                pl.BlockSpec((Cout, 9 * Cmid), lambda n: (0, 0)),
                pl.BlockSpec((Cout, 1), lambda n: (0, 0)),
                pl.BlockSpec((1, J1), lambda n: (0, 0)),
            ],
            out_specs=pl.BlockSpec((None, Cout, J2), lambda n: (n, 0, 0)),
            scratch_shapes=[
                pltpu.VMEM((9 * Cin, J1), jnp.bfloat16),        # conv1 im2col
                pltpu.VMEM((Cmid, J1 + TAIL), jnp.bfloat16),    # relu(conv1)
            ],
        ),
        compiler_params=pltpu.CompilerParams(
            dimension_semantics=("parallel",),
            vmem_limit_bytes=vmem_limit,
        ),
        cost_estimate=pl.CostEstimate(flops=flops, transcendentals=0,
                                      bytes_accessed=bytes_accessed),
    )(xs, w1t, b1r, w2t, b2r, mask)

    # (N, Cout, H*WS) is already channel-major: reshape + drop padding columns.
    return out.reshape(N, Cout, H, WS)[:, :, :, :W]


relu_rb = jax.jit(_relu_rb_impl)


def ref_forward(x_nchw, w1_oihw, b1, w2_oihw, b2):
    """Pure-JAX reference matching the PyTorch forward (NCHW / OIHW)."""
    y = jnp.maximum(x_nchw, 0.0)
    y = jax.lax.conv_general_dilated(
        y, w1_oihw, (1, 1), "SAME",
        dimension_numbers=("NCHW", "OIHW", "NCHW")) + b1.reshape(1, -1, 1, 1)
    y = jnp.maximum(y, 0.0)
    y = jax.lax.conv_general_dilated(
        y, w2_oihw, (1, 1), "SAME",
        dimension_numbers=("NCHW", "OIHW", "NCHW")) + b2.reshape(1, -1, 1, 1)
    return y + x_nchw


if __name__ == "__main__":
    # Small shapes consistent with ReluRB(inchannels=4, outchannels=4).
    N, Cin, H, W = 2, 4, 16, 16
    Cmid, Cout = 64, 4

    key = jax.random.PRNGKey(0)
    kx, kw1, kb1, kw2, kb2 = jax.random.split(key, 5)

    x = jax.random.normal(kx, (N, Cin, H, W), jnp.float32)
    w1 = 0.05 * jax.random.normal(kw1, (Cmid, Cin, 3, 3), jnp.float32)
    b1 = 0.05 * jax.random.normal(kb1, (Cmid,), jnp.float32)
    w2 = 0.05 * jax.random.normal(kw2, (Cout, Cmid, 3, 3), jnp.float32)
    b2 = 0.05 * jax.random.normal(kb2, (Cout,), jnp.float32)

    out = relu_rb(x, w1, b1, w2, b2)
    out = jax.block_until_ready(out)

    expected = ref_forward(x, w1, b1, w2, b2)
    # bf16 matmul operands (f32 accumulation) -> looser tolerance vs f32 reference.
    np.testing.assert_allclose(np.asarray(out), np.asarray(expected),
                               rtol=2e-2, atol=2e-2)
    print("KERNEL_OK")
</pallas_src>

<mosaic_0001>
module attributes {stable_mosaic.version = 11 : i64} {
  func.func @kernel(%arg0: i32, %arg1: memref<1x4x504xf32, #tpu.memory_space<vmem>>, %arg2: memref<64x36xbf16, #tpu.memory_space<vmem>>, %arg3: memref<64x1xf32, #tpu.memory_space<vmem>>, %arg4: memref<4x576xbf16, #tpu.memory_space<vmem>>, %arg5: memref<4x1xf32, #tpu.memory_space<vmem>>, %arg6: memref<1x432xf32, #tpu.memory_space<vmem>>, %arg7: memref<1x4x384xf32, #tpu.memory_space<vmem>>, %arg8: memref<36x432xbf16, #tpu.memory_space<vmem>>, %arg9: memref<64x560xbf16, #tpu.memory_space<vmem>>) attributes {dimension_semantics = [#tpu.dimension_semantics<parallel>], iteration_bounds = array<i64: 2>, scalar_prefetch = 0 : i64, scratch_operands = 2 : i64, tpu.core_type = #tpu.core_type<tc>, window_params = [{transform_indices = @transform_0, window_bounds = array<i64: 1, 4, 504>}, {pipeline_mode = #tpu.pipeline_mode<synchronous>, transform_indices = @transform_1, window_bounds = array<i64: 64, 36>}, {pipeline_mode = #tpu.pipeline_mode<synchronous>, transform_indices = @transform_2, window_bounds = array<i64: 64, 1>}, {pipeline_mode = #tpu.pipeline_mode<synchronous>, transform_indices = @transform_3, window_bounds = array<i64: 4, 576>}, {pipeline_mode = #tpu.pipeline_mode<synchronous>, transform_indices = @transform_4, window_bounds = array<i64: 4, 1>}, {pipeline_mode = #tpu.pipeline_mode<synchronous>, transform_indices = @transform_5, window_bounds = array<i64: 1, 432>}, {transform_indices = @transform_6, window_bounds = array<i64: 1, 4, 384>}]} {
    %c0 = arith.constant 0 : index
    %c0_0 = arith.constant 0 : index
    %c0_1 = arith.constant 0 : index
    %0 = vector.load %arg1[%c0, %c0_0, %c0_1] : memref<1x4x504xf32, #tpu.memory_space<vmem>>, vector<1x4x432xf32>
    %1 = vector.shape_cast %0 : vector<1x4x432xf32> to vector<4x432xf32>
    %cst = arith.constant 0.000000e+00 : f32
    %2 = vector.broadcast %cst : f32 to vector<4x432xf32>
    %3 = arith.maximumf %1, %2 : vector<4x432xf32>
    %4 = arith.truncf %3 : vector<4x432xf32> to vector<4x432xbf16>
    %c0_2 = arith.constant 0 : index
    %c0_3 = arith.constant 0 : index
    %5 = vector.load %arg8[%c0_2, %c0_3] : memref<36x432xbf16, #tpu.memory_space<vmem>>, vector<4x432xbf16>
    tpu.vector_store %arg8[%c0_2, %c0_3], %4 {strides = array<i32>} : memref<36x432xbf16, #tpu.memory_space<vmem>>, vector<4x432xbf16>,
    %c0_4 = arith.constant 0 : index
    %c0_5 = arith.constant 0 : index
    %c1 = arith.constant 1 : index
    %6 = vector.load %arg1[%c0_4, %c0_5, %c1] : memref<1x4x504xf32, #tpu.memory_space<vmem>>, vector<1x4x432xf32>
    %7 = vector.shape_cast %6 : vector<1x4x432xf32> to vector<4x432xf32>
    %cst_6 = arith.constant 0.000000e+00 : f32
    %8 = vector.broadcast %cst_6 : f32 to vector<4x432xf32>
    %9 = arith.maximumf %7, %8 : vector<4x432xf32>
    %10 = arith.truncf %9 : vector<4x432xf32> to vector<4x432xbf16>
    %c4 = arith.constant 4 : index
    %c0_7 = arith.constant 0 : index
    %11 = vector.load %arg8[%c4, %c0_7] : memref<36x432xbf16, #tpu.memory_space<vmem>>, vector<4x432xbf16>
    tpu.vector_store %arg8[%c4, %c0_7], %10 {strides = array<i32>} : memref<36x432xbf16, #tpu.memory_space<vmem>>, vector<4x432xbf16>,
    %c0_8 = arith.constant 0 : index
    %c0_9 = arith.constant 0 : index
    %c2 = arith.constant 2 : index
    %12 = vector.load %arg1[%c0_8, %c0_9, %c2] : memref<1x4x504xf32, #tpu.memory_space<vmem>>, vector<1x4x432xf32>
    %13 = vector.shape_cast %12 : vector<1x4x432xf32> to vector<4x432xf32>
    %cst_10 = arith.constant 0.000000e+00 : f32
    %14 = vector.broadcast %cst_10 : f32 to vector<4x432xf32>
    %15 = arith.maximumf %13, %14 : vector<4x432xf32>
    %16 = arith.truncf %15 : vector<4x432xf32> to vector<4x432xbf16>
    %c8 = arith.constant 8 : index
    %c0_11 = arith.constant 0 : index
    %17 = vector.load %arg8[%c8, %c0_11] : memref<36x432xbf16, #tpu.memory_space<vmem>>, vector<4x432xbf16>
    tpu.vector_store %arg8[%c8, %c0_11], %16 {strides = array<i32>} : memref<36x432xbf16, #tpu.memory_space<vmem>>, vector<4x432xbf16>,
    %c0_12 = arith.constant 0 : index
    %c0_13 = arith.constant 0 : index
    %c24 = arith.constant 24 : index
    %18 = vector.load %arg1[%c0_12, %c0_13, %c24] : memref<1x4x504xf32, #tpu.memory_space<vmem>>, vector<1x4x432xf32>
    %19 = vector.shape_cast %18 : vector<1x4x432xf32> to vector<4x432xf32>
    %cst_14 = arith.constant 0.000000e+00 : f32
    %20 = vector.broadcast %cst_14 : f32 to vector<4x432xf32>
    %21 = arith.maximumf %19, %20 : vector<4x432xf32>
    %22 = arith.truncf %21 : vector<4x432xf32> to vector<4x432xbf16>
    %c12 = arith.constant 12 : index
    %c0_15 = arith.constant 0 : index
    %23 = vector.load %arg8[%c12, %c0_15] : memref<36x432xbf16, #tpu.memory_space<vmem>>, vector<4x432xbf16>
    tpu.vector_store %arg8[%c12, %c0_15], %22 {strides = array<i32>} : memref<36x432xbf16, #tpu.memory_space<vmem>>, vector<4x432xbf16>,
    %c0_16 = arith.constant 0 : index
    %c0_17 = arith.constant 0 : index
    %c25 = arith.constant 25 : index
    %24 = vector.load %arg1[%c0_16, %c0_17, %c25] : memref<1x4x504xf32, #tpu.memory_space<vmem>>, vector<1x4x432xf32>
    %25 = vector.shape_cast %24 : vector<1x4x432xf32> to vector<4x432xf32>
    %cst_18 = arith.constant 0.000000e+00 : f32
    %26 = vector.broadcast %cst_18 : f32 to vector<4x432xf32>
    %27 = arith.maximumf %25, %26 : vector<4x432xf32>
    %28 = arith.truncf %27 : vector<4x432xf32> to vector<4x432xbf16>
    %c16 = arith.constant 16 : index
    %c0_19 = arith.constant 0 : index
    %29 = vector.load %arg8[%c16, %c0_19] : memref<36x432xbf16, #tpu.memory_space<vmem>>, vector<4x432xbf16>
    tpu.vector_store %arg8[%c16, %c0_19], %28 {strides = array<i32>} : memref<36x432xbf16, #tpu.memory_space<vmem>>, vector<4x432xbf16>,
    %c0_20 = arith.constant 0 : index
    %c0_21 = arith.constant 0 : index
    %c26 = arith.constant 26 : index
    %30 = vector.load %arg1[%c0_20, %c0_21, %c26] : memref<1x4x504xf32, #tpu.memory_space<vmem>>, vector<1x4x432xf32>
    %31 = vector.shape_cast %30 : vector<1x4x432xf32> to vector<4x432xf32>
    %cst_22 = arith.constant 0.000000e+00 : f32
    %32 = vector.broadcast %cst_22 : f32 to vector<4x432xf32>
    %33 = arith.maximumf %31, %32 : vector<4x432xf32>
    %34 = arith.truncf %33 : vector<4x432xf32> to vector<4x432xbf16>
    %c20 = arith.constant 20 : index
    %c0_23 = arith.constant 0 : index
    %35 = vector.load %arg8[%c20, %c0_23] : memref<36x432xbf16, #tpu.memory_space<vmem>>, vector<4x432xbf16>
    tpu.vector_store %arg8[%c20, %c0_23], %34 {strides = array<i32>} : memref<36x432xbf16, #tpu.memory_space<vmem>>, vector<4x432xbf16>,
    %c0_24 = arith.constant 0 : index
    %c0_25 = arith.constant 0 : index
    %c48 = arith.constant 48 : index
    %36 = vector.load %arg1[%c0_24, %c0_25, %c48] : memref<1x4x504xf32, #tpu.memory_space<vmem>>, vector<1x4x432xf32>
    %37 = vector.shape_cast %36 : vector<1x4x432xf32> to vector<4x432xf32>
    %cst_26 = arith.constant 0.000000e+00 : f32
    %38 = vector.broadcast %cst_26 : f32 to vector<4x432xf32>
    %39 = arith.maximumf %37, %38 : vector<4x432xf32>
    %40 = arith.truncf %39 : vector<4x432xf32> to vector<4x432xbf16>
    %c24_27 = arith.constant 24 : index
    %c0_28 = arith.constant 0 : index
    %41 = vector.load %arg8[%c24_27, %c0_28] : memref<36x432xbf16, #tpu.memory_space<vmem>>, vector<4x432xbf16>
    tpu.vector_store %arg8[%c24_27, %c0_28], %40 {strides = array<i32>} : memref<36x432xbf16, #tpu.memory_space<vmem>>, vector<4x432xbf16>,
    %c0_29 = arith.constant 0 : index
    %c0_30 = arith.constant 0 : index
    %c49 = arith.constant 49 : index
    %42 = vector.load %arg1[%c0_29, %c0_30, %c49] : memref<1x4x504xf32, #tpu.memory_space<vmem>>, vector<1x4x432xf32>
    %43 = vector.shape_cast %42 : vector<1x4x432xf32> to vector<4x432xf32>
    %cst_31 = arith.constant 0.000000e+00 : f32
    %44 = vector.broadcast %cst_31 : f32 to vector<4x432xf32>
    %45 = arith.maximumf %43, %44 : vector<4x432xf32>
    %46 = arith.truncf %45 : vector<4x432xf32> to vector<4x432xbf16>
    %c28 = arith.constant 28 : index
    %c0_32 = arith.constant 0 : index
    %47 = vector.load %arg8[%c28, %c0_32] : memref<36x432xbf16, #tpu.memory_space<vmem>>, vector<4x432xbf16>
    tpu.vector_store %arg8[%c28, %c0_32], %46 {strides = array<i32>} : memref<36x432xbf16, #tpu.memory_space<vmem>>, vector<4x432xbf16>,
    %c0_33 = arith.constant 0 : index
    %c0_34 = arith.constant 0 : index
    %c50 = arith.constant 50 : index
    %48 = vector.load %arg1[%c0_33, %c0_34, %c50] : memref<1x4x504xf32, #tpu.memory_space<vmem>>, vector<1x4x432xf32>
    %49 = vector.shape_cast %48 : vector<1x4x432xf32> to vector<4x432xf32>
    %cst_35 = arith.constant 0.000000e+00 : f32
    %50 = vector.broadcast %cst_35 : f32 to vector<4x432xf32>
    %51 = arith.maximumf %49, %50 : vector<4x432xf32>
    %52 = arith.truncf %51 : vector<4x432xf32> to vector<4x432xbf16>
    %c32 = arith.constant 32 : index
    %c0_36 = arith.constant 0 : index
    %53 = vector.load %arg8[%c32, %c0_36] : memref<36x432xbf16, #tpu.memory_space<vmem>>, vector<4x432xbf16>
    tpu.vector_store %arg8[%c32, %c0_36], %52 {strides = array<i32>} : memref<36x432xbf16, #tpu.memory_space<vmem>>, vector<4x432xbf16>,
    %c0_37 = arith.constant 0 : index
    %c0_38 = arith.constant 0 : index
    %54 = vector.load %arg2[%c0_37, %c0_38] : memref<64x36xbf16, #tpu.memory_space<vmem>>, vector<64x36xbf16>
    %c0_39 = arith.constant 0 : index
    %c0_40 = arith.constant 0 : index
    %55 = vector.load %arg8[%c0_39, %c0_40] : memref<36x432xbf16, #tpu.memory_space<vmem>>, vector<36x432xbf16>
    %cst_41 = arith.constant dense<0.000000e+00> : vector<64x432xf32>
    %56 = tpu.matmul %54, %55, %cst_41 {dimension_numbers = #tpu.dot_dimension_numbers<[1], [0], [0], [1], [0, 0, 1, 1], [], []>} : vector<64x36xbf16>, vector<36x432xbf16>, vector<64x432xf32> -> vector<64x432xf32>
    %c0_42 = arith.constant 0 : index
    %c0_43 = arith.constant 0 : index
    %57 = vector.load %arg3[%c0_42, %c0_43] : memref<64x1xf32, #tpu.memory_space<vmem>>, vector<64x1xf32>
    %58 = vector.broadcast %57 : vector<64x1xf32> to vector<64x432xf32>
    %59 = arith.addf %56, %58 : vector<64x432xf32>
    %cst_44 = arith.constant 0.000000e+00 : f32
    %60 = vector.broadcast %cst_44 : f32 to vector<64x432xf32>
    %61 = arith.maximumf %59, %60 : vector<64x432xf32>
    %c0_45 = arith.constant 0 : index
    %c0_46 = arith.constant 0 : index
    %62 = vector.load %arg6[%c0_45, %c0_46] : memref<1x432xf32, #tpu.memory_space<vmem>>, vector<1x432xf32>
    %63 = vector.broadcast %62 : vector<1x432xf32> to vector<64x432xf32>
    %64 = arith.mulf %61, %63 : vector<64x432xf32>
    %65 = arith.truncf %64 : vector<64x432xf32> to vector<64x432xbf16>
    %c0_47 = arith.constant 0 : index
    %c0_48 = arith.constant 0 : index
    %66 = vector.load %arg9[%c0_47, %c0_48] : memref<64x560xbf16, #tpu.memory_space<vmem>>, vector<64x432xbf16>
    tpu.vector_store %arg9[%c0_47, %c0_48], %65 {strides = array<i32>} : memref<64x560xbf16, #tpu.memory_space<vmem>>, vector<64x432xbf16>,
    %cst_49 = arith.constant 0.000000e+00 : bf16
    %67 = vector.broadcast %cst_49 : bf16 to vector<64x128xbf16>
    %c0_50 = arith.constant 0 : index
    %c432 = arith.constant 432 : index
    %68 = vector.load %arg9[%c0_50, %c432] : memref<64x560xbf16, #tpu.memory_space<vmem>>, vector<64x128xbf16>
    tpu.vector_store %arg9[%c0_50, %c432], %67 {strides = array<i32>} : memref<64x560xbf16, #tpu.memory_space<vmem>>, vector<64x128xbf16>,
    %c0_51 = arith.constant 0 : index
    %c0_52 = arith.constant 0 : index
    %69 = vector.load %arg5[%c0_51, %c0_52] : memref<4x1xf32, #tpu.memory_space<vmem>>, vector<4x1xf32>
    %c0_53 = arith.constant 0 : index
    %c0_54 = arith.constant 0 : index
    %70 = vector.load %arg4[%c0_53, %c0_54] : memref<4x576xbf16, #tpu.memory_space<vmem>>, vector<4x64xbf16>
    %c0_55 = arith.constant 0 : index
    %c0_56 = arith.constant 0 : index
    %71 = vector.load %arg9[%c0_55, %c0_56] : memref<64x560xbf16, #tpu.memory_space<vmem>>, vector<64x384xbf16>
    %cst_57 = arith.constant dense<0.000000e+00> : vector<4x384xf32>
    %72 = tpu.matmul %70, %71, %cst_57 {dimension_numbers = #tpu.dot_dimension_numbers<[1], [0], [0], [1], [0, 0, 1, 1], [], []>} : vector<4x64xbf16>, vector<64x384xbf16>, vector<4x384xf32> -> vector<4x384xf32>
    %73 = vector.broadcast %69 : vector<4x1xf32> to vector<4x384xf32>
    %74 = arith.addf %73, %72 : vector<4x384xf32>
    %c0_58 = arith.constant 0 : index
    %c64 = arith.constant 64 : index
    %75 = vector.load %arg4[%c0_58, %c64] : memref<4x576xbf16, #tpu.memory_space<vmem>>, vector<4x64xbf16>
    %c0_59 = arith.constant 0 : index
    %c1_60 = arith.constant 1 : index
    %76 = vector.load %arg9[%c0_59, %c1_60] : memref<64x560xbf16, #tpu.memory_space<vmem>>, vector<64x384xbf16>
    %cst_61 = arith.constant dense<0.000000e+00> : vector<4x384xf32>
    %77 = tpu.matmul %75, %76, %cst_61 {dimension_numbers = #tpu.dot_dimension_numbers<[1], [0], [0], [1], [0, 0, 1, 1], [], []>} : vector<4x64xbf16>, vector<64x384xbf16>, vector<4x384xf32> -> vector<4x384xf32>
    %78 = arith.addf %74, %77 : vector<4x384xf32>
    %c0_62 = arith.constant 0 : index
    %c128 = arith.constant 128 : index
    %79 = vector.load %arg4[%c0_62, %c128] : memref<4x576xbf16, #tpu.memory_space<vmem>>, vector<4x64xbf16>
    %c0_63 = arith.constant 0 : index
    %c2_64 = arith.constant 2 : index
    %80 = vector.load %arg9[%c0_63, %c2_64] : memref<64x560xbf16, #tpu.memory_space<vmem>>, vector<64x384xbf16>
    %cst_65 = arith.constant dense<0.000000e+00> : vector<4x384xf32>
    %81 = tpu.matmul %79, %80, %cst_65 {dimension_numbers = #tpu.dot_dimension_numbers<[1], [0], [0], [1], [0, 0, 1, 1], [], []>} : vector<4x64xbf16>, vector<64x384xbf16>, vector<4x384xf32> -> vector<4x384xf32>
    %82 = arith.addf %78, %81 : vector<4x384xf32>
    %c0_66 = arith.constant 0 : index
    %c192 = arith.constant 192 : index
    %83 = vector.load %arg4[%c0_66, %c192] : memref<4x576xbf16, #tpu.memory_space<vmem>>, vector<4x64xbf16>
    %c0_67 = arith.constant 0 : index
    %c24_68 = arith.constant 24 : index
    %84 = vector.load %arg9[%c0_67, %c24_68] : memref<64x560xbf16, #tpu.memory_space<vmem>>, vector<64x384xbf16>
    %cst_69 = arith.constant dense<0.000000e+00> : vector<4x384xf32>
    %85 = tpu.matmul %83, %84, %cst_69 {dimension_numbers = #tpu.dot_dimension_numbers<[1], [0], [0], [1], [0, 0, 1, 1], [], []>} : vector<4x64xbf16>, vector<64x384xbf16>, vector<4x384xf32> -> vector<4x384xf32>
    %86 = arith.addf %82, %85 : vector<4x384xf32>
    %c0_70 = arith.constant 0 : index
    %c256 = arith.constant 256 : index
    %87 = vector.load %arg4[%c0_70, %c256] : memref<4x576xbf16, #tpu.memory_space<vmem>>, vector<4x64xbf16>
    %c0_71 = arith.constant 0 : index
    %c25_72 = arith.constant 25 : index
    %88 = vector.load %arg9[%c0_71, %c25_72] : memref<64x560xbf16, #tpu.memory_space<vmem>>, vector<64x384xbf16>
    %cst_73 = arith.constant dense<0.000000e+00> : vector<4x384xf32>
    %89 = tpu.matmul %87, %88, %cst_73 {dimension_numbers = #tpu.dot_dimension_numbers<[1], [0], [0], [1], [0, 0, 1, 1], [], []>} : vector<4x64xbf16>, vector<64x384xbf16>, vector<4x384xf32> -> vector<4x384xf32>
    %90 = arith.addf %86, %89 : vector<4x384xf32>
    %c0_74 = arith.constant 0 : index
    %c320 = arith.constant 320 : index
    %91 = vector.load %arg4[%c0_74, %c320] : memref<4x576xbf16, #tpu.memory_space<vmem>>, vector<4x64xbf16>
    %c0_75 = arith.constant 0 : index
    %c26_76 = arith.constant 26 : index
    %92 = vector.load %arg9[%c0_75, %c26_76] : memref<64x560xbf16, #tpu.memory_space<vmem>>, vector<64x384xbf16>
    %cst_77 = arith.constant dense<0.000000e+00> : vector<4x384xf32>
    %93 = tpu.matmul %91, %92, %cst_77 {dimension_numbers = #tpu.dot_dimension_numbers<[1], [0], [0], [1], [0, 0, 1, 1], [], []>} : vector<4x64xbf16>, vector<64x384xbf16>, vector<4x384xf32> -> vector<4x384xf32>
    %94 = arith.addf %90, %93 : vector<4x384xf32>
    %c0_78 = arith.constant 0 : index
    %c384 = arith.constant 384 : index
    %95 = vector.load %arg4[%c0_78, %c384] : memref<4x576xbf16, #tpu.memory_space<vmem>>, vector<4x64xbf16>
    %c0_79 = arith.constant 0 : index
    %c48_80 = arith.constant 48 : index
    %96 = vector.load %arg9[%c0_79, %c48_80] : memref<64x560xbf16, #tpu.memory_space<vmem>>, vector<64x384xbf16>
    %cst_81 = arith.constant dense<0.000000e+00> : vector<4x384xf32>
    %97 = tpu.matmul %95, %96, %cst_81 {dimension_numbers = #tpu.dot_dimension_numbers<[1], [0], [0], [1], [0, 0, 1, 1], [], []>} : vector<4x64xbf16>, vector<64x384xbf16>, vector<4x384xf32> -> vector<4x384xf32>
    %98 = arith.addf %94, %97 : vector<4x384xf32>
    %c0_82 = arith.constant 0 : index
    %c448 = arith.constant 448 : index
    %99 = vector.load %arg4[%c0_82, %c448] : memref<4x576xbf16, #tpu.memory_space<vmem>>, vector<4x64xbf16>
    %c0_83 = arith.constant 0 : index
    %c49_84 = arith.constant 49 : index
    %100 = vector.load %arg9[%c0_83, %c49_84] : memref<64x560xbf16, #tpu.memory_space<vmem>>, vector<64x384xbf16>
    %cst_85 = arith.constant dense<0.000000e+00> : vector<4x384xf32>
    %101 = tpu.matmul %99, %100, %cst_85 {dimension_numbers = #tpu.dot_dimension_numbers<[1], [0], [0], [1], [0, 0, 1, 1], [], []>} : vector<4x64xbf16>, vector<64x384xbf16>, vector<4x384xf32> -> vector<4x384xf32>
    %102 = arith.addf %98, %101 : vector<4x384xf32>
    %c0_86 = arith.constant 0 : index
    %c512 = arith.constant 512 : index
    %103 = vector.load %arg4[%c0_86, %c512] : memref<4x576xbf16, #tpu.memory_space<vmem>>, vector<4x64xbf16>
    %c0_87 = arith.constant 0 : index
    %c50_88 = arith.constant 50 : index
    %104 = vector.load %arg9[%c0_87, %c50_88] : memref<64x560xbf16, #tpu.memory_space<vmem>>, vector<64x384xbf16>
    %cst_89 = arith.constant dense<0.000000e+00> : vector<4x384xf32>
    %105 = tpu.matmul %103, %104, %cst_89 {dimension_numbers = #tpu.dot_dimension_numbers<[1], [0], [0], [1], [0, 0, 1, 1], [], []>} : vector<4x64xbf16>, vector<64x384xbf16>, vector<4x384xf32> -> vector<4x384xf32>
    %106 = arith.addf %102, %105 : vector<4x384xf32>
    %c0_90 = arith.constant 0 : index
    %c0_91 = arith.constant 0 : index
    %c50_92 = arith.constant 50 : index
    %107 = vector.load %arg1[%c0_90, %c0_91, %c50_92] : memref<1x4x504xf32, #tpu.memory_space<vmem>>, vector<1x4x384xf32>
    %108 = vector.shape_cast %107 : vector<1x4x384xf32> to vector<4x384xf32>
    %109 = arith.addf %106, %108 : vector<4x384xf32>
    %c0_93 = arith.constant 0 : index
    %c0_94 = arith.constant 0 : index
    %c0_95 = arith.constant 0 : index
    %110 = vector.load %arg7[%c0_93, %c0_94, %c0_95] : memref<1x4x384xf32, #tpu.memory_space<vmem>>, vector<1x4x384xf32>
    %111 = vector.shape_cast %110 : vector<1x4x384xf32> to vector<4x384xf32>
    %112 = vector.shape_cast %109 : vector<4x384xf32> to vector<1x4x384xf32>
    tpu.vector_store %arg7[%c0_93, %c0_94, %c0_95], %112 {strides = array<i32>} : memref<1x4x384xf32, #tpu.memory_space<vmem>>, vector<1x4x384xf32>,
    return
  }
  func.func @transform_0(%arg0: i32) -> (i32, i32, i32) {
    %c0_i32 = arith.constant 0 : i32
    %c0_i32_0 = arith.constant 0 : i32
    %c0_i32_1 = arith.constant 0 : i32
    return %arg0, %c0_i32, %c0_i32_0 : i32, i32, i32
  }
  func.func @transform_1(%arg0: i32) -> (i32, i32) {
    %c0_i32 = arith.constant 0 : i32
    %c0_i32_0 = arith.constant 0 : i32
    %c0_i32_1 = arith.constant 0 : i32
    return %c0_i32, %c0_i32_0 : i32, i32
  }
  func.func @transform_2(%arg0: i32) -> (i32, i32) {
    %c0_i32 = arith.constant 0 : i32
    %c0_i32_0 = arith.constant 0 : i32
    %c0_i32_1 = arith.constant 0 : i32
    return %c0_i32, %c0_i32_0 : i32, i32
  }
  func.func @transform_3(%arg0: i32) -> (i32, i32) {
    %c0_i32 = arith.constant 0 : i32
    %c0_i32_0 = arith.constant 0 : i32
    %c0_i32_1 = arith.constant 0 : i32
    return %c0_i32, %c0_i32_0 : i32, i32
  }
  func.func @transform_4(%arg0: i32) -> (i32, i32) {
    %c0_i32 = arith.constant 0 : i32
    %c0_i32_0 = arith.constant 0 : i32
    %c0_i32_1 = arith.constant 0 : i32
    return %c0_i32, %c0_i32_0 : i32, i32
  }
  func.func @transform_5(%arg0: i32) -> (i32, i32) {
    %c0_i32 = arith.constant 0 : i32
    %c0_i32_0 = arith.constant 0 : i32
    %c0_i32_1 = arith.constant 0 : i32
    return %c0_i32, %c0_i32_0 : i32, i32
  }
  func.func @transform_6(%arg0: i32) -> (i32, i32, i32) {
    %c0_i32 = arith.constant 0 : i32
    %c0_i32_0 = arith.constant 0 : i32
    %c0_i32_1 = arith.constant 0 : i32
    return %arg0, %c0_i32, %c0_i32_0 : i32, i32, i32
  }
}

</mosaic_0001>

<bundles_post_ra>
// kernel: _relu_rb_impl.1
= control target key start
LH: loop header
LB: loop body
LE: loop exit
PB: predicated region body
PF: predicated region fallthrough
CT: control target
= control target key end

     0   :  { %s2922_s21 = smov 0   ;;  %s3971_s0 = inlined_call_operand.vmem [shape: f32[2,4,504], index: 0, kind: input, shape index: {}]   ;;  %s3972_s1 = inlined_call_operand.vmem [shape: bf16[64,36], index: 1, kind: input, shape index: {}]   ;;  %s3973_s2 = inlined_call_operand.vmem [shape: f32[64,1], index: 2, kind: input, shape index: {}]   ;;  %s3974_s3 = inlined_call_operand.vmem [shape: bf16[4,576], index: 3, kind: input, shape index: {}]   ;;  %s3975_s4 = inlined_call_operand.vmem [shape: f32[4,1], index: 4, kind: input, shape index: {}]   ;;  %s3976_s5 = inlined_call_operand.vmem [shape: f32[1,432], index: 5, kind: input, shape index: {}]   ;;  %s3977_s6 = inlined_call_operand.vmem [shape: f32[2,4,384], index: 6, kind: output, shape index: {}]  }
   0x1 LB: > { %s2575_s22 = sadd.s32 4294967295, %s2872_s21   ;;  %p2579_p0 = scmp.ge.s32.totalorder %s2872_s21, 1  ;;  %s2872_s21 = sphi %s2922_s21, %s16_s21  }
   0x2   : > { %p212_p1 = scmp.lt.s32.totalorder %s2872_s21, 3 }
   0x4   : > { %p213_p2 = pnand %p2579_p0, %p212_p1 }
   0x6   : > { %216 = sbr.rel (%p213_p2) target bundleno = 1003 (0x3eb), region = 44 }
   0xd   : > { %p242_p3 = scmp.lt.s32.totalorder %s2575_s22, 1  ;;  %vm280_vm0 = vcmask 1041408   ;;  %vm281_vm1 = vcmask 390148   ;;  %s2874_s27 = smov 103   ;;  %v3978_v11 = vmov 0   ;;  %v619_v12 = vld [vmem:[%s3973_s2 + $0x8] sm:$0xff] }
   0xe   : > { %vm2941_vm2 = vmor %vm281_vm1, %vm280_vm0  ;;  %s2875_s28 = smov 126   ;;  %s2876_s29 = smov 127   ;;  %866 = vmatprep.mubr.bf16.mxu1 %v3978_v11  ;;  %793 = vmatprep.mubr.bf16.mxu0 %v3978_v11  ;;  %v618_v13 = vld [vmem:[%s3973_s2] sm:$0xff]  ;;  %v620_v14 = vld [vmem:[%s3973_s2 + $0x10] sm:$0xff]  ;;  %vm316_vm3 = vcmask 1043456   ;;  %vm359_vm4 = vcmask 1031168  }
   0xf   : > { %s4015_s22 = smov (!%p242_p3, %s2575_s22), 1  ;;  %s2877_s30 = smov 104   ;;  %2842 = vset.pattern.permute.xlu1 %v3978_v11  ;;  %2841 = vset.pattern.permute.xlu0 %v3978_v11  ;;  %v621_v15 = vld [vmem:[%s3973_s2 + $0x18] sm:$0xff]  ;;  %v622_v16 = vld [vmem:[%s3973_s2 + $0x20] sm:$0xff]  ;;  %v623_v17 = vld [vmem:[%s3973_s2 + $0x28] sm:$0xff]  ;;  %vm324_vm5 = vcmask 1043458  }
  0x10   : > { %s2647_s23 = sshll.u32 %s4015_s22, 4  ;;  %s2878_s7 = smov 102   ;;  %v624_v18 = vld [vmem:[%s3973_s2 + $0x30] sm:$0xff]  ;;  %v625_v19 = vld [vmem:[%s3973_s2 + $0x38] sm:$0xff]  ;;  %vm325_vm6 = vcmask 392198   ;;  %vm437_vm7 = vcmask 842752  }
  0x11   : > { %s2936_s26 = scalar_lea.vmem %s3971_s0, %s2647_s23  ;;  %s2879_s8 = smov 80   ;;  %vm318_vm8 = vcmask 1039360   ;;  %vm2996_vm9 = vmor %vm325_vm6, %vm324_vm5  ;;  %vm399_vm10 = vcmask 850944   ;;  %vm477_vm11 = vcmask 834560   ;;  %vm515_vm12 = vcmask 654336   ;;  %v2860_v34 = vld [vmem:[%s3972_s1 + $0x10] sm:$0xff]  }
  0x12   : > { %v406_v0 = vld [vmem:[%s2936_s26] sm:$0xff]  ;;  %v329_v1 = vld [vmem:[%s2936_s26 + $0x8] sm:$0xff]  ;;  %s2880_s9 = smov 79   ;;  %s2881_s10 = smov 78   ;;  %vm555_vm13 = vcmask 646144   ;;  %vm593_vm14 = vcmask 637952  }
  0x13   : > { %v408_v2 = vmax.f32 %v406_v0, 0.0  ;;  %v331_v3 = vmax.f32 %v329_v1, 0.0  ;;  %vm736_vm15 = vcmask 293888   ;;  %s2884_s13 = smov 64   ;;  %vm1026_vm1 = vcmask 1047936  }
  0x15   : > { %v412_v4 = vcombine.high %v408_v2, %v408_v2  ;;  %v335_v5 = vcombine.high %v331_v3, %v331_v3 }
  0x17   : > { %v2656_v6 = vpack.c.bf16 %v412_v4, %v408_v2  ;;  %v2653_v7 = vpack.c.bf16 %v335_v5, %v331_v3 }
  0x19   : > { %430 = vrot.lane.b32.xlu0 %v2656_v6, %s2874_s27  ;;  %352 = vrot.lane.b32.xlu1 %v2656_v6, %s2875_s28  ;;  %v308_v9 = vrot.slane %v2656_v6, 6  ;;  %283 = vst.msk [vmem:[#allocation2 + $0x8] sm:$0x33] %vm2941_vm2, %v2653_v7  ;;  %279 = vst [vmem:[#allocation2] sm:$0x33] %v2656_v6  ;;  %v309_v10 = vrot.slane %v2653_v7, 6 }
  0x1d   : > { %354 = vrot.lane.b32.xlu1 %v2653_v7, %s2875_s28  ;;  %310 = vrot.lane.b32.xlu0 %v308_v9, %s2876_s29 }
  0x21   : > { %432 = vrot.lane.b32.xlu1 %v2653_v7, %s2874_s27  ;;  %312 = vrot.lane.b32.xlu0 %v309_v10, %s2876_s29 }
  0x25   : > { %394 = vrot.lane.b32.xlu1 %v309_v10, %s2877_s30  ;;  %392 = vrot.lane.b32.xlu0 %v308_v9, %s2877_s30 }
  0x29   : > { %472 = vrot.lane.b32.xlu1 %v309_v10, %s2878_s7  ;;  %470 = vrot.lane.b32.xlu0 %v308_v9, %s2878_s7 }
  0x2d   : > { %510 = vrot.lane.b32.xlu1 %v2653_v7, %s2879_s8  ;;  %508 = vrot.lane.b32.xlu0 %v2656_v6, %s2879_s8 }
  0x31   : > { %550 = vrot.lane.b32.xlu1 %v309_v10, %s2880_s9  ;;  %548 = vrot.lane.b32.xlu0 %v308_v9, %s2880_s9 }
  0x35   : > { %588 = vrot.lane.b32.xlu1 %v2653_v7, %s2881_s10  ;;  %586 = vrot.lane.b32.xlu0 %v2656_v6, %s2881_s10 }
  0x39   : > { %633 = vperm.xlu1 %2842, %v619_v12   ;;  %628 = vperm.xlu0 %2841, %v618_v13  }
  0x3d   : > { %638 = vperm.xlu1 %2842, %v620_v14   ;;  %643 = vperm.xlu0 %2841, %v621_v15  }
  0x41   : > { %648 = vperm.xlu1 %2842, %v622_v16   ;;  %653 = vperm.xlu0 %2841, %v623_v17  }
  0x45   : > { %658 = vperm.xlu1 %2842, %v624_v18   ;;  %663 = vperm.xlu0 %2841, %v625_v19  }
  0x8b   : > { %v431_v20 = vpop.permute.xlu0 %430  ;;  %v353_v21 = vpop.permute.xlu1 %352 }
  0x8c   : > { %v356_v24 = vrot.slane %v353_v21, 4  ;;  %v434_v26 = vrot.slane %v431_v20, 4 }
  0x8f   : > { %v355_v22 = vpop.permute.xlu1 %354  ;;  %v311_v23 = vpop.permute.xlu0 %310 }
  0x90   : > { %v357_v25 = vrot.slane %v355_v22, 4  ;;  %v314_v29 = vrot.slane %v311_v23, 4 }
  0x92   : > { %v358_v27 = vsel %vm316_vm3, %v356_v24, %v357_v25  ;;  %v361_v28 = vsel %vm359_vm4, %v355_v22, %v357_v25 }
  0x93   : > { %v360_v30 = vsel %vm359_vm4, %v353_v21, %v358_v27  ;;  %365 = vst.msk [vmem:[#allocation2 + $0x18] sm:$0x33] %vm2941_vm2, %v361_v28  ;;  %v433_v31 = vpop.permute.xlu1 %432  ;;  %v313_v32 = vpop.permute.xlu0 %312 }
  0x94   : > { %364 = vst [vmem:[#allocation2 + $0x10] sm:$0x33] %v360_v30  ;;  %v435_v33 = vrot.slane %v433_v31, 4  ;;  %v315_v35 = vrot.slane %v313_v32, 4 }
  0x96   : > { %v436_v36 = vsel %vm316_vm3, %v434_v26, %v435_v33  ;;  %v439_v37 = vsel %vm437_vm7, %v433_v31, %v435_v33  ;;  %v317_v38 = vsel %vm316_vm3, %v314_v29, %v315_v35  ;;  %v320_v39 = vsel %vm318_vm8, %v313_v32, %v315_v35  ;;  %v2858_v31 = vld [vmem:[%s3972_s1] sm:$0xff]   ;;  %v2859_v33 = vld [vmem:[%s3972_s1 + $0x8] sm:$0xff]   ;;  %v2861_v35 = vld [vmem:[%s3972_s1 + $0x18] sm:$0xff]  }
  0x97   : > { %v438_v40 = vsel %vm437_vm7, %v431_v20, %v436_v36  ;;  %443 = vst.msk [vmem:[#allocation2 + $0x28] sm:$0x33] %vm2941_vm2, %v439_v37  ;;  %v319_v41 = vsel %vm318_vm8, %v311_v23, %v317_v38  ;;  %v395_v42 = vpop.permute.xlu1 %394  ;;  %v393_v43 = vpop.permute.xlu0 %392  ;;  %v941_v36 = vlaneseq  ;;  %v2883_v37 = vmov 1983009808  }
  0x98   : > { %327 = vst.msk [vmem:[#allocation2 + $0x8] sm:$0xcc] %vm2996_vm9, %v320_v39  ;;  %442 = vst [vmem:[#allocation2 + $0x20] sm:$0x33] %v438_v40  ;;  %v397_v44 = vrot.slane %v395_v42, 4  ;;  %v396_v45 = vrot.slane %v393_v43, 4  ;;  %v1160_v38 = vunpack.c.l.s4 %v2883_v37 }
  0x99   : > { %323 = vst [vmem:[#allocation2] sm:$0xcc] %v319_v41  ;;  %v942_v39 = vshrl.u32 %v941_v36, 7 }
  0x9a   : > { %v401_v46 = vsel %vm399_vm10, %v395_v42, %v397_v44  ;;  %v398_v47 = vsel %vm316_vm3, %v396_v45, %v397_v44  ;;  %v1161_v40 = vunpack.c.0.s8 %v1160_v38  ;;  %v2865_v42 = vld.sshfl [vmem:[%s3974_s3 + $0x2] sm:$0x3 pattern:$0x76325410]  ;;  %v3980_v45 = vmov 0.0  }
  0x9b   : > { %405 = vst.msk [vmem:[#allocation2 + $0x18] sm:$0xcc] %vm2996_vm9, %v401_v46  ;;  %v400_v48 = vsel %vm399_vm10, %v393_v43, %v398_v47  ;;  %v473_v49 = vpop.permute.xlu1 %472  ;;  %v471_v50 = vpop.permute.xlu0 %470  ;;  %v3074_v43 = vld [vmem:[%s3974_s3] sm:$0x3]  ;;  %1511 = vrot.lane.b32.xlu1 %v2865_v42, %s2884_s13  ;;  %v951_v46 = vsub.s32 2, %v942_v39 }
  0x9c   : > { %404 = vst [vmem:[#allocation2 + $0x10] sm:$0xcc] %v400_v48  ;;  %v475_v51 = vrot.slane %v473_v49, 4  ;;  %v474_v52 = vrot.slane %v471_v50, 4  ;;  %v3066_v41 = vsub.s32 %v1161_v40, %v942_v39  ;;  %v939_v47 = vld [vmem:[%s3976_s5] sm:$0xf] }
  0x9d   : > { %v943_v48 = vsub.s32 0, %v942_v39 }
  0x9e   : > { %v479_v53 = vsel %vm477_vm11, %v473_v49, %v475_v51  ;;  %v476_v54 = vsel %vm316_vm3, %v474_v52, %v475_v51  ;;  %v1165_v44 = vrot.slane %v3074_v43, %v3066_v41  ;;  %v955_v49 = vsub.s32 3, %v942_v39 }
  0x9f   : > { %483 = vst.msk [vmem:[#allocation2 + $0x28] sm:$0xcc] %vm2996_vm9, %v479_v53  ;;  %v478_v55 = vsel %vm477_vm11, %v471_v50, %v476_v54  ;;  %v511_v56 = vpop.permute.xlu1 %510  ;;  %v509_v57 = vpop.permute.xlu0 %508  ;;  %v947_v51 = vsub.s32 1, %v942_v39 }
  0xa0   : > { %482 = vst [vmem:[#allocation2 + $0x20] sm:$0xcc] %v478_v55  ;;  %v513_v58 = vrot.slane %v511_v56, 4  ;;  %v512_v59 = vrot.slane %v509_v57, 4  ;;  %v608_v3 = vld [vmem:[#allocation2] sm:$0xff]  ;;  %1166 = vrot.lane.b32.xlu0 %v1165_v44, %s2884_s13  ;;  %v3084_v55 = vrot.slane %v939_v47, %v951_v46 }
  0xa2   : > { %v517_v60 = vsel %vm515_vm12, %v511_v56, %v513_v58  ;;  %v514_v61 = vsel %vm316_vm3, %v512_v59, %v513_v58  ;;  %v2843_v62 = vld [vmem:[#allocation2 + $0xc] ss:$16 sps:$4 sm:$0xff]   ;;  %v2847_v63 = vld [vmem:[#allocation2 + $0x8] ss:$16 sps:$4 sm:$0xff]   ;;  %v3086_v59 = vrot.slane %v939_v47, %v943_v48 }
  0xa3   : > { %521 = vst.msk [vmem:[#allocation2 + $0x38] sm:$0x33] %vm2941_vm2, %v517_v60  ;;  %v516_v0 = vsel %vm515_vm12, %v509_v57, %v514_v61  ;;  %v551_v1 = vpop.permute.xlu1 %550  ;;  %v549_v2 = vpop.permute.xlu0 %548  ;;  %v610_v4 = vld [vmem:[#allocation2 + $0x10] sm:$0xff]  ;;  %834 = vmatprep.subr.bf16.mxu1 %v2843_v62  ;;  %v3088_v61 = vrot.slane %v939_v47, %v955_v49 }
  0xa4   : > { %v2845_v5 = vld [vmem:[#allocation2 + $0x4] ss:$16 sps:$4 sm:$0xff]   ;;  %520 = vst [vmem:[#allocation2 + $0x30] sm:$0x33] %v516_v0  ;;  %v553_v6 = vrot.slane %v551_v1, 4  ;;  %v552_v7 = vrot.slane %v549_v2, 4  ;;  %v2605_v9 = vcombine.low %v608_v3, %v610_v4  ;;  %835 = vmatpush1.bf16.msra.mxu1 %v2847_v63 }
  0xa5   : > { %761 = vmatprep.subr.bf16.mxu0 %v2845_v5 }
  0xa6   : > { %v557_v10 = vsel %vm555_vm13, %v551_v1, %v553_v6  ;;  %v554_v12 = vsel %vm316_vm3, %v552_v7, %v553_v6  ;;  %762 = vmatpush1.bf16.msra.mxu0 %v2605_v9 }
  0xa7   : > { %561 = vst.msk [vmem:[#allocation2 + $0x38] sm:$0xcc] %vm2996_vm9, %v557_v10  ;;  %v556_v13 = vsel %vm555_vm13, %v549_v2, %v554_v12  ;;  %v589_v14 = vpop.permute.xlu1 %588  ;;  %v587_v15 = vpop.permute.xlu0 %586  ;;  %v3090_v2 = vrot.slane %v939_v47, %v947_v51 }
  0xa8   : > { %560 = vst [vmem:[#allocation2 + $0x30] sm:$0xcc] %v556_v13  ;;  %v591_v16 = vrot.slane %v589_v14, 4  ;;  %v590_v17 = vrot.slane %v587_v15, 4 }
  0xaa   : > { %v595_v18 = vsel %vm593_vm14, %v589_v14, %v591_v16  ;;  %v592_v19 = vsel %vm316_vm3, %v590_v17, %v591_v16  ;;  %vm1049_vm3 = vcmask 523264  }
  0xab   : > { %599 = vst.msk [vmem:[#allocation2 + $0x48] sm:$0x33] %vm2941_vm2, %v595_v18  ;;  %v594_v20 = vsel %vm593_vm14, %v587_v15, %v592_v19  ;;  %vm2886_vm2 = vmmov 0  }
  0xac   : > { %598 = vst [vmem:[#allocation2 + $0x40] sm:$0x33] %v594_v20 }
  0xae   : > { %v2848_v21 = vld [vmem:[#allocation2 + $0x2c] ss:$16 sps:$4 sm:$0xff]   ;;  %v2852_v22 = vld [vmem:[#allocation2 + $0x28] ss:$16 sps:$4 sm:$0xff]  }
  0xaf   : > { %v2850_v23 = vld [vmem:[#allocation2 + $0x24] ss:$16 sps:$4 sm:$0xff]   ;;  %v2853_v24 = vld [vmem:[#allocation2 + $0x20] ss:$16 sps:$4 sm:$0xff]   ;;  %836 = vmatprep.subr.bf16.mxu1 %v2848_v21 }
  0xb0   : > { %763 = vmatprep.subr.bf16.mxu0 %v2850_v23  ;;  %837 = vmatpush1.bf16.msra.mxu1 %v2852_v22 }
  0xb1   : > { %764 = vmatpush1.bf16.msra.mxu0 %v2853_v24 }
  0xb2   : > { %v617_v25 = vld [vmem:[#allocation2 + $0x48] sm:$0x33] }
  0xb3   : > { %v2616_v26 = vcombine.high %v617_v25, %v617_v25  ;;  %v616_v27 = vld [vmem:[#allocation2 + $0x40] sm:$0x33]  ;;  %v2615_v28 = vcombine.low %v617_v25, %v617_v25 }
  0xb4   : > { %v2614_v29 = vcombine.high %v616_v27, %v616_v27  ;;  %v2613_v30 = vcombine.low %v616_v27, %v616_v27 }
  0xb5   : > { %2622 = vmatprep.subr.msk.bf16.mxu1 %vm280_vm0, %v2616_v26  ;;  %v756_v8 = vsel %vm280_vm0, %v2615_v28, 0 }
  0xb6   : > { %2617 = vmatprep.subr.msk.bf16.mxu0 %vm280_vm0, %v2614_v29  ;;  %839 = vmatpush1.bf16.msra.mxu1 %v756_v8  ;;  %v750_v32 = vsel %vm280_vm0, %v2613_v30, 0  ;;  %vm1012_vm0 = vcmask 392192  }
  0xb7   : > { %766 = vmatpush1.bf16.msra.mxu0 %v750_v32  ;;  %2711 = vmatprep.subr.bf16.mxu1 %v3980_v45 }
  0xb8   : > { %v634_v50 = vpop.permute.xlu1 %633  ;;  %v629_v52 = vpop.permute.xlu0 %628 }
  0xb9   : > { %2623 = vmatmul.mubr.msk.bf16.vlgmr.msra.gmra.mrb[0].mxu1 %vm736_vm15, %v2858_v31 }
  0xba   : > { %2618 = vmatmul.mubr.msk.bf16.vlgmr.msra.gmra.mrb[0].mxu0 %vm736_vm15, %v2858_v31  ;;  %876 = vmatprep.mubr.bf16.mxu1 %v3978_v11 }
  0xbb   : > { %803 = vmatprep.mubr.bf16.mxu0 %v3978_v11 }
  0xbc   : > { %v639_v21 = vpop.permute.xlu1 %638  ;;  %v644_v25 = vpop.permute.xlu0 %643 }
  0xc1   : > { %2624 = vmatmul.mubr.msk.bf16.gmra.mrb[4].mxu1 %vm736_vm15, %v2859_v33 }
  0xc2   : > { %2619 = vmatmul.mubr.msk.bf16.gmra.mrb[4].mxu0 %vm736_vm15, %v2859_v33  ;;  %886 = vmatprep.mubr.bf16.mxu1 %v3978_v11 }
  0xc3   : > { %813 = vmatprep.mubr.bf16.mxu0 %v3978_v11 }
  0xc9   : > { %2625 = vmatmul.mubr.msk.bf16.gmra.mrb[8].mxu1 %vm736_vm15, %v2860_v34 }
  0xca   : > { %2620 = vmatmul.mubr.msk.bf16.gmra.mrb[8].mxu0 %vm736_vm15, %v2860_v34  ;;  %896 = vmatprep.mubr.bf16.mxu1 %v3978_v11 }
  0xcb   : > { %823 = vmatprep.mubr.bf16.mxu0 %v3978_v11 }
  0xd1   : > { %2626 = vmatmul.mubr.msk.bf16.gmra.mrb[12].mxu1 %vm736_vm15, %v2861_v35 }
  0xd2   : > { %2621 = vmatmul.mubr.msk.bf16.gmra.mrb[12].mxu0 %vm736_vm15, %v2861_v35  ;;  %2719 = vmatprep.mubr.msk.bf16.mxu1 %vm2886_vm2, %v3980_v45 }
  0xd3   : > { %1085 = vmatprep.mubr.bf16.mxu0 %v3978_v11 }
 0x18c   : > { %v868_v53 = vpop.f32.mrb[0].mxu1 }
 0x18d   : > { %v869_v54 = vadd.f32 %v868_v53, %v629_v52  ;;  %v795_v56 = vpop.f32.mrb[0].mxu0  ;;  %v870_v57 = vpop.f32.mrb[1].mxu1 }
 0x18e   : > { %v796_v58 = vadd.f32 %v795_v56, %v629_v52  ;;  %v871_v60 = vadd.f32 %v870_v57, %v629_v52  ;;  %v797_v62 = vpop.f32.mrb[1].mxu0  ;;  %v872_v63 = vpop.f32.mrb[2].mxu1 }
 0x18f   : > { %v909_v0 = vmax.f32 %v869_v54, 0.0  ;;  %v798_v1 = vadd.f32 %v797_v62, %v629_v52  ;;  %v873_v3 = vadd.f32 %v872_v63, %v634_v50  ;;  %v799_v4 = vpop.f32.mrb[2].mxu0  ;;  %v874_v5 = vpop.f32.mrb[3].mxu1 }
 0x190   : > { %v907_v6 = vmax.f32 %v796_v58, 0.0  ;;  %v910_v7 = vmax.f32 %v871_v60, 0.0  ;;  %v800_v9 = vadd.f32 %v799_v4, %v634_v50  ;;  %v875_v10 = vadd.f32 %v874_v5, %v634_v50  ;;  %v801_v12 = vpop.f32.mrb[3].mxu0  ;;  %v654_v5 = vpop.permute.xlu0 %653 }
 0x191   : > { %v963_v13 = vmul.f32 %v3084_v55, %v909_v0  ;;  %v908_v14 = vmax.f32 %v798_v1, 0.0  ;;  %v913_v15 = vmax.f32 %v873_v3, 0.0  ;;  %v802_v16 = vadd.f32 %v801_v12, %v634_v50  ;;  %v649_v0 = vpop.permute.xlu1 %648 }
 0x192   : > { %v961_v17 = vmul.f32 %v3086_v59, %v907_v6  ;;  %v964_v18 = vmul.f32 %v3088_v61, %v910_v7  ;;  %v911_v19 = vmax.f32 %v800_v9, 0.0  ;;  %v914_v20 = vmax.f32 %v875_v10, 0.0 }
 0x193   : > { %v962_v22 = vmul.f32 %v3090_v2, %v908_v14  ;;  %v967_v23 = vmul.f32 %v3084_v55, %v913_v15  ;;  %v912_v24 = vmax.f32 %v802_v16, 0.0 }
 0x194   : > { %v965_v26 = vmul.f32 %v3086_v59, %v911_v19  ;;  %v968_v27 = vmul.f32 %v3088_v61, %v914_v20  ;;  %v878_v28 = vpop.f32.mrb[4].mxu1 }
 0x195   : > { %v3099_v29 = vpack.c.bf16 %v967_v23, %v963_v13  ;;  %v966_v30 = vmul.f32 %v3090_v2, %v912_v24  ;;  %v879_v8 = vadd.f32 %v878_v28, %v639_v21  ;;  %v805_v31 = vpop.f32.mrb[4].mxu0  ;;  %v880_v32 = vpop.f32.mrb[5].mxu1 }
 0x196   : > { %v3102_v33 = vpack.c.bf16 %v965_v26, %v961_v17  ;;  %v996_v34 = vpack.c.bf16 %v968_v27, %v964_v18  ;;  %v806_v35 = vadd.f32 %v805_v31, %v639_v21  ;;  %v881_v36 = vadd.f32 %v880_v32, %v639_v21  ;;  %v807_v37 = vpop.f32.mrb[5].mxu0  ;;  %v882_v38 = vpop.f32.mrb[6].mxu1 }
 0x197   : > { %v3104_v39 = vpack.c.bf16 %v966_v30, %v962_v22  ;;  %v917_v40 = vmax.f32 %v879_v8, 0.0  ;;  %v808_v42 = vadd.f32 %v807_v37, %v639_v21  ;;  %v883_v44 = vadd.f32 %v882_v38, %v644_v25  ;;  %v809_v46 = vpop.f32.mrb[6].mxu0  ;;  %v884_v47 = vpop.f32.mrb[7].mxu1  ;;  %1517 = vrot.lane.b32.xlu1 %v3099_v29, %s2877_s30  ;;  %1188 = vrot.lane.b32.xlu0 %v3099_v29, %s2876_s29 }
 0x198   : > { %1013 = vst.msk [vmem:[#allocation3 + $0x18] sm:$0xff] %vm1012_vm0, %v996_v34  ;;  %v915_v48 = vmax.f32 %v806_v35, 0.0  ;;  %v918_v49 = vmax.f32 %v881_v36, 0.0  ;;  %v810_v50 = vadd.f32 %v809_v46, %v644_v25  ;;  %v885_v51 = vadd.f32 %v884_v47, %v644_v25  ;;  %v811_v52 = vpop.f32.mrb[7].mxu0  ;;  %2712 = vmatpush3.bf16.msra.mxu1 %v3099_v29  ;;  %v659_v46 = vpop.permute.xlu1 %658 }
 0x199   : > { %1027 = vst.msk [vmem:[#allocation3 + $0x18] sm:$0xff] %vm1026_vm1, %v3978_v11  ;;  %v971_v53 = vmul.f32 %v3084_v55, %v917_v40  ;;  %v916_v54 = vmax.f32 %v808_v42, 0.0  ;;  %v921_v56 = vmax.f32 %v883_v44, 0.0  ;;  %v812_v57 = vadd.f32 %v811_v52, %v644_v25  ;;  %1053 = vmatprep.subr.bf16.mxu0 %v3104_v39  ;;  %2713 = vmatprep.subr.bf16.mxu1 %v3980_v45 }
 0x19a   : > { %v969_v58 = vmul.f32 %v3086_v59, %v915_v48  ;;  %v972_v60 = vmul.f32 %v3088_v61, %v918_v49  ;;  %v919_v62 = vmax.f32 %v810_v50, 0.0  ;;  %v922_v63 = vmax.f32 %v885_v51, 0.0  ;;  %1054 = vmatpush1.bf16.msra.mxu0 %v3102_v33  ;;  %v664_v50 = vpop.permute.xlu0 %663 }
 0x19b   : > { %v970_v1 = vmul.f32 %v3090_v2, %v916_v54  ;;  %v975_v3 = vmul.f32 %v3084_v55, %v921_v56  ;;  %v920_v4 = vmax.f32 %v812_v57, 0.0  ;;  %1693 = vrot.lane.b32.xlu1 %v3099_v29, %s2874_s27  ;;  %1364 = vrot.lane.b32.xlu0 %v3099_v29, %s2875_s28 }
 0x19c   : > { %v973_v6 = vmul.f32 %v3086_v59, %v919_v62  ;;  %v976_v7 = vmul.f32 %v3088_v61, %v922_v63  ;;  %v888_v9 = vpop.f32.mrb[8].mxu1 }
 0x19d   : > { %v3128_v10 = vpack.c.bf16 %v975_v3, %v971_v53  ;;  %v974_v12 = vmul.f32 %v3090_v2, %v920_v4  ;;  %v889_v13 = vadd.f32 %v888_v9, %v649_v0  ;;  %v815_v14 = vpop.f32.mrb[8].mxu0  ;;  %v890_v15 = vpop.f32.mrb[9].mxu1 }
 0x19e   : > { %v3131_v16 = vpack.c.bf16 %v973_v6, %v969_v58  ;;  %v1000_v17 = vpack.c.bf16 %v976_v7, %v972_v60  ;;  %v816_v18 = vadd.f32 %v815_v14, %v649_v0  ;;  %v891_v19 = vadd.f32 %v890_v15, %v649_v0  ;;  %v817_v20 = vpop.f32.mrb[9].mxu0  ;;  %v892_v21 = vpop.f32.mrb[10].mxu1 }
 0x19f   : > { %v3133_v22 = vpack.c.bf16 %v974_v12, %v970_v1  ;;  %v925_v23 = vmax.f32 %v889_v13, 0.0  ;;  %v818_v24 = vadd.f32 %v817_v20, %v649_v0  ;;  %v893_v25 = vadd.f32 %v892_v21, %v654_v5  ;;  %v894_v26 = vpop.f32.mrb[11].mxu1  ;;  %v819_v27 = vpop.f32.mrb[10].mxu0  ;;  %1846 = vrot.lane.b32.xlu0 %v3099_v29, %s2878_s7  ;;  %2714 = vmatpush3.bf16.msra.mxu1 %v3128_v10 }
 0x1a0   : > { %1017 = vst.msk [vmem:[#allocation3 + $0x40] sm:$0xff] %vm1012_vm0, %v1000_v17  ;;  %v923_v28 = vmax.f32 %v816_v18, 0.0  ;;  %v926_v30 = vmax.f32 %v891_v19, 0.0  ;;  %v895_v8 = vadd.f32 %v894_v26, %v654_v5  ;;  %v820_v31 = vadd.f32 %v819_v27, %v654_v5  ;;  %v821_v32 = vpop.f32.mrb[11].mxu0  ;;  %1184 = vrot.lane.b32.xlu1 %v3102_v33, %s2876_s29  ;;  %2715 = vmatprep.subr.bf16.mxu1 %v3980_v45  ;;  %v3172_v20 = vld [vmem:[#allocation3 + $0x18] sm:$0xff] }
 0x1a1   : > { %1029 = vst.msk [vmem:[#allocation3 + $0x40] sm:$0xff] %vm1026_vm1, %v3978_v11  ;;  %v979_v34 = vmul.f32 %v3084_v55, %v925_v23  ;;  %v924_v35 = vmax.f32 %v818_v24, 0.0  ;;  %v929_v36 = vmax.f32 %v893_v25, 0.0  ;;  %v822_v37 = vadd.f32 %v821_v32, %v654_v5  ;;  %1055 = vmatprep.subr.bf16.mxu0 %v3133_v22 }
 0x1a2   : > { %v977_v38 = vmul.f32 %v3086_v59, %v923_v28  ;;  %v980_v40 = vmul.f32 %v3088_v61, %v926_v30  ;;  %v930_v42 = vmax.f32 %v895_v8, 0.0  ;;  %v927_v44 = vmax.f32 %v820_v31, 0.0  ;;  %1056 = vmatpush1.bf16.msra.mxu0 %v3131_v16 }
 0x1a3   : > { %v978_v47 = vmul.f32 %v3090_v2, %v924_v35  ;;  %v983_v48 = vmul.f32 %v3084_v55, %v929_v36  ;;  %v928_v49 = vmax.f32 %v822_v37, 0.0  ;;  %1513 = vrot.lane.b32.xlu0 %v3102_v33, %s2877_s30 }
 0x1a4   : > { %v984_v51 = vmul.f32 %v3088_v61, %v930_v42  ;;  %v981_v52 = vmul.f32 %v3086_v59, %v927_v44  ;;  %v898_v53 = vpop.f32.mrb[12].mxu1  ;;  %1360 = vrot.lane.b32.xlu1 %v3102_v33, %s2875_s28 }
 0x1a5   : > { %v3159_v54 = vpack.c.bf16 %v983_v48, %v979_v34  ;;  %v982_v56 = vmul.f32 %v3090_v2, %v928_v49  ;;  %v899_v57 = vadd.f32 %v898_v53, %v659_v46  ;;  %v825_v58 = vpop.f32.mrb[12].mxu0  ;;  %v900_v60 = vpop.f32.mrb[13].mxu1 }
 0x1a6   : > { %v1004_v62 = vpack.c.bf16 %v984_v51, %v980_v40  ;;  %v3162_v63 = vpack.c.bf16 %v981_v52, %v977_v38  ;;  %v826_v0 = vadd.f32 %v825_v58, %v659_v46  ;;  %v901_v1 = vadd.f32 %v900_v60, %v659_v46  ;;  %v827_v3 = vpop.f32.mrb[13].mxu0  ;;  %v902_v4 = vpop.f32.mrb[14].mxu1 }
 0x1a7   : > { %v3164_v5 = vpack.c.bf16 %v982_v56, %v978_v47  ;;  %v933_v6 = vmax.f32 %v899_v57, 0.0  ;;  %v828_v7 = vadd.f32 %v827_v3, %v659_v46  ;;  %v903_v9 = vadd.f32 %v902_v4, %v664_v50  ;;  %v904_v12 = vpop.f32.mrb[15].mxu1  ;;  %v829_v13 = vpop.f32.mrb[14].mxu0  ;;  %2716 = vmatpush3.bf16.msra.mxu1 %v3159_v54  ;;  %1689 = vrot.lane.b32.xlu0 %v3102_v33, %s2874_s27  ;;  %v3368_v4 = vld [vmem:[%s3974_s3 + $0x4] sm:$0x3] }
 0x1a8   : > { %1021 = vst.msk [vmem:[#allocation3 + $0x68] sm:$0xff] %vm1012_vm0, %v1004_v62  ;;  %v931_v14 = vmax.f32 %v826_v0, 0.0  ;;  %v934_v15 = vmax.f32 %v901_v1, 0.0  ;;  %v905_v17 = vadd.f32 %v904_v12, %v664_v50  ;;  %v830_v18 = vadd.f32 %v829_v13, %v664_v50  ;;  %v831_v19 = vpop.f32.mrb[15].mxu0  ;;  %1842 = vrot.lane.b32.xlu1 %v3102_v33, %s2878_s7  ;;  %2717 = vmatprep.subr.bf16.mxu1 %v3980_v45 }
 0x1a9   : > { %1031 = vst.msk [vmem:[#allocation3 + $0x68] sm:$0xff] %vm1026_vm1, %v3978_v11  ;;  %v987_v21 = vmul.f32 %v3084_v55, %v933_v6  ;;  %v932_v23 = vmax.f32 %v828_v7, 0.0  ;;  %v937_v24 = vmax.f32 %v903_v9, 0.0  ;;  %v832_v25 = vadd.f32 %v831_v19, %v664_v50  ;;  %1057 = vmatprep.subr.bf16.mxu0 %v3164_v5  ;;  %3993 = vst [vmem:[#allocation5_spill] sm:$0xff] %v3368_v4 }
 0x1aa   : > { %v985_v26 = vmul.f32 %v3086_v59, %v931_v14  ;;  %v988_v27 = vmul.f32 %v3088_v61, %v934_v15  ;;  %v938_v28 = vmax.f32 %v905_v17, 0.0  ;;  %v935_v30 = vmax.f32 %v830_v18, 0.0  ;;  %1058 = vmatpush1.bf16.msra.mxu0 %v3162_v63 }
 0x1ab   : > { %v986_v8 = vmul.f32 %v3090_v2, %v932_v23  ;;  %v991_v31 = vmul.f32 %v3084_v55, %v937_v24  ;;  %v936_v32 = vmax.f32 %v832_v25, 0.0  ;;  %1190 = vrot.lane.b32.xlu0 %v3172_v20, %s2876_s29  ;;  %v1839_v9 = vrot.slane %v3368_v4, %v3066_v41 }
 0x1ac   : > { %v992_v34 = vmul.f32 %v3088_v61, %v938_v28  ;;  %v989_v35 = vmul.f32 %v3086_v59, %v935_v30  ;;  %1186 = vrot.lane.b32.xlu1 %v3104_v39, %s2876_s29  ;;  %v3301_v59 = vpop.permute.xlu1 %1511  ;;  %v3303_v61 = vpop.permute.xlu0 %1166 }
 0x1ad   : > { %v3190_v36 = vpack.c.bf16 %v991_v31, %v987_v21  ;;  %v990_v37 = vmul.f32 %v3090_v2, %v936_v32 }
 0x1ae   : > { %v1008_v38 = vpack.c.bf16 %v992_v34, %v988_v27  ;;  %v3193_v40 = vpack.c.bf16 %v989_v35, %v985_v26 }
 0x1af   : > { %v3195_v42 = vpack.c.bf16 %v990_v37, %v986_v8  ;;  %2718 = vmatpush3.bf16.msra.mxu1 %v3190_v36  ;;  %1515 = vrot.lane.b32.xlu0 %v3104_v39, %s2877_s30 }
 0x1b0   : > { %1025 = vst.msk [vmem:[#allocation3 + $0x90] sm:$0xff] %vm1012_vm0, %v1008_v38  ;;  %1362 = vrot.lane.b32.xlu1 %v3104_v39, %s2875_s28  ;;  %2723 = vmatprep.subr.bf16.mxu1 %v3980_v45  ;;  %v3289_v55 = vld [vmem:[#allocation3 + $0x68] sm:$0xff] }
 0x1b1   : > { %1033 = vst.msk [vmem:[#allocation3 + $0x90] sm:$0xff] %vm1026_vm1, %v3978_v11  ;;  %1059 = vmatprep.subr.bf16.mxu0 %v3195_v42 }
 0x1b2   : > { %1060 = vmatpush1.bf16.msra.mxu0 %v3193_v40  ;;  %2720 = vmatmul.mubr.msk.bf16.vlgmr.msra.gmra.mrb[16].mxu1 %vm1049_vm3, %v3074_v43 }
 0x1b3   : > { %1691 = vrot.lane.b32.xlu0 %v3104_v39, %s2874_s27  ;;  %2731 = vmatprep.mubr.msk.bf16.mxu1 %vm2886_vm2, %v3980_v45 }
 0x1b4   : > { %1366 = vrot.lane.b32.xlu1 %v3172_v20, %s2875_s28 }
 0x1b5   : > { %2627 = vmatmul.mubr.msk.bf16.vlgmr.msra.gmra.mrb[16].mxu0 %vm1049_vm3, %v3074_v43  ;;  %v3247_v43 = vld [vmem:[#allocation3 + $0x40] sm:$0xff] }
 0x1b6   : > { %1275 = vmatprep.mubr.bf16.mxu0 %v3978_v11 }
 0x1b7   : > { %1695 = vrot.lane.b32.xlu0 %v3172_v20, %s2874_s27 }
 0x1b8   : > { %1519 = vrot.lane.b32.xlu1 %v3172_v20, %s2877_s30  ;;  %v3363_v3 = vld [vmem:[#allocation3 + $0x90] sm:$0xff] }
 0x1bb   : > { %1848 = vrot.lane.b32.xlu0 %v3172_v20, %s2878_s7 }
 0x1bc   : > { %1844 = vrot.lane.b32.xlu1 %v3104_v39, %s2878_s7 }
 0x1bf   : > { %1196 = vrot.lane.b32.xlu0 %v3128_v10, %s2876_s29 }
 0x1c0   : > { %1372 = vrot.lane.b32.xlu1 %v3128_v10, %s2875_s28 }
 0x1c3   : > { %1701 = vrot.lane.b32.xlu0 %v3128_v10, %s2874_s27 }
 0x1c4   : > { %1525 = vrot.lane.b32.xlu1 %v3128_v10, %s2877_s30 }
 0x1c7   : > { %1854 = vrot.lane.b32.xlu0 %v3128_v10, %s2878_s7 }
 0x1c8   : > { %1192 = vrot.lane.b32.xlu1 %v3131_v16, %s2876_s29 }
 0x1cb   : > { %1368 = vrot.lane.b32.xlu0 %v3131_v16, %s2875_s28 }
 0x1cc   : > { %1697 = vrot.lane.b32.xlu1 %v3131_v16, %s2874_s27 }
 0x1cf   : > { %1521 = vrot.lane.b32.xlu0 %v3131_v16, %s2877_s30 }
 0x1d0   : > { %1850 = vrot.lane.b32.xlu1 %v3131_v16, %s2878_s7 }
 0x1d3   : > { %1198 = vrot.lane.b32.xlu0 %v3247_v43, %s2876_s29 }
 0x1d4   : > { %1194 = vrot.lane.b32.xlu1 %v3133_v22, %s2876_s29 }
 0x1d7   : > { %1370 = vrot.lane.b32.xlu0 %v3133_v22, %s2875_s28 }
 0x1d8   : > { %1374 = vrot.lane.b32.xlu1 %v3247_v43, %s2875_s28 }
 0x1db   : > { %1523 = vrot.lane.b32.xlu0 %v3133_v22, %s2877_s30 }
 0x1dc   : > { %1527 = vrot.lane.b32.xlu1 %v3247_v43, %s2877_s30 }
 0x1df   : > { %1703 = vrot.lane.b32.xlu0 %v3247_v43, %s2874_s27 }
 0x1e0   : > { %1699 = vrot.lane.b32.xlu1 %v3133_v22, %s2874_s27 }
 0x1e3   : > { %1856 = vrot.lane.b32.xlu0 %v3247_v43, %s2878_s7 }
 0x1e4   : > { %1852 = vrot.lane.b32.xlu1 %v3133_v22, %s2878_s7 }
 0x1e7   : > { %1204 = vrot.lane.b32.xlu0 %v3159_v54, %s2876_s29 }
 0x1e8   : > { %1380 = vrot.lane.b32.xlu1 %v3159_v54, %s2875_s28 }
 0x1eb   : > { %1709 = vrot.lane.b32.xlu0 %v3159_v54, %s2874_s27 }
 0x1ec   : > { %1533 = vrot.lane.b32.xlu1 %v3159_v54, %s2877_s30 }
 0x1ef   : > { %1862 = vrot.lane.b32.xlu0 %v3159_v54, %s2878_s7 }
 0x1f0   : > { %1200 = vrot.lane.b32.xlu1 %v3162_v63, %s2876_s29 }
 0x1f3   : > { %1376 = vrot.lane.b32.xlu0 %v3162_v63, %s2875_s28 }
 0x1f4   : > { %1705 = vrot.lane.b32.xlu1 %v3162_v63, %s2874_s27 }
 0x1f7   : > { %1529 = vrot.lane.b32.xlu0 %v3162_v63, %s2877_s30 }
 0x1f8   : > { %1858 = vrot.lane.b32.xlu1 %v3162_v63, %s2878_s7 }
 0x1fb   : > { %1206 = vrot.lane.b32.xlu0 %v3289_v55, %s2876_s29 }
 0x1fc   : > { %1202 = vrot.lane.b32.xlu1 %v3164_v5, %s2876_s29 }
 0x1ff   : > { %1378 = vrot.lane.b32.xlu0 %v3164_v5, %s2875_s28 }
 0x200   : > { %1382 = vrot.lane.b32.xlu1 %v3289_v55, %s2875_s28 }
 0x203   : > { %1531 = vrot.lane.b32.xlu0 %v3164_v5, %s2877_s30 }
 0x204   : > { %1535 = vrot.lane.b32.xlu1 %v3289_v55, %s2877_s30 }
 0x207   : > { %1711 = vrot.lane.b32.xlu0 %v3289_v55, %s2874_s27 }
 0x208   : > { %1707 = vrot.lane.b32.xlu1 %v3164_v5, %s2874_s27 }
 0x209   : > { %v3311_v2 = vpop.permute.xlu1 %1517  ;;  %v1189_v44 = vpop.permute.xlu0 %1188 }
 0x20b   : > { %1864 = vrot.lane.b32.xlu0 %v3289_v55, %s2878_s7 }
 0x20c   : > { %1860 = vrot.lane.b32.xlu1 %v3164_v5, %s2878_s7 }
 0x20d   : > { %v3317_v46 = vpop.permute.xlu1 %1693  ;;  %v3319_v47 = vpop.permute.xlu0 %1364 }
 0x20f   : > { %1212 = vrot.lane.b32.xlu0 %v3190_v36, %s2876_s29 }
 0x210   : > { %1388 = vrot.lane.b32.xlu1 %v3190_v36, %s2875_s28 }
 0x211   : > { %v3325_v48 = vpop.permute.xlu0 %1846 }
 0x212   : > { %v1185_v49 = vpop.permute.xlu1 %1184 }
 0x213   : > { %1717 = vrot.lane.b32.xlu0 %v3190_v36, %s2874_s27 }
 0x214   : > { %1541 = vrot.lane.b32.xlu1 %v3190_v36, %s2877_s30 }
 0x215   : > { %v3331_v50 = vpop.permute.xlu0 %1513 }
 0x216   : > { %v3333_v51 = vpop.permute.xlu1 %1360 }
 0x217   : > { %1870 = vrot.lane.b32.xlu0 %v3190_v36, %s2878_s7 }
 0x218   : > { %1208 = vrot.lane.b32.xlu1 %v3193_v40, %s2876_s29 }
 0x219   : > { %v3339_v52 = vpop.permute.xlu0 %1689 }
 0x21a   : > { %v3341_v53 = vpop.permute.xlu1 %1842 }
 0x21b   : > { %3992 = vst [vmem:[#allocation4_spill] sm:$0xff] %v3341_v53  ;;  %1384 = vrot.lane.b32.xlu0 %v3193_v40, %s2875_s28 }
 0x21c   : > { %1713 = vrot.lane.b32.xlu1 %v3193_v40, %s2874_s27 }
 0x21d   : > { %v1191_v56 = vpop.permute.xlu0 %1190 }
 0x21e   : > { %v1218_v57 = vsel %vm318_vm8, %v1189_v44, %v1191_v56  ;;  %v1187_v58 = vpop.permute.xlu1 %1186 }
 0x21f   : > { %1537 = vrot.lane.b32.xlu0 %v3193_v40, %s2877_s30  ;;  %2724 = vmatpush3.bf16.msra.mxu1 %v1218_v57  ;;  %v1217_v60 = vsel %vm318_vm8, %v1187_v58, %v1189_v44  ;;  %v1216_v62 = vsel %vm318_vm8, %v1185_v49, %v1187_v58 }
 0x220   : > { %1866 = vrot.lane.b32.xlu1 %v3193_v40, %s2878_s7  ;;  %1243 = vmatprep.subr.bf16.mxu0 %v1217_v60 }
 0x221   : > { %1244 = vmatpush1.bf16.msra.mxu0 %v1216_v62  ;;  %v3354_v0 = vpop.permute.xlu0 %1515  ;;  %2725 = vmatprep.subr.bf16.mxu1 %v3980_v45 }
 0x222   : > { %v3357_v1 = vpop.permute.xlu1 %1362 }
 0x223   : > { %2022 = vrot.lane.b32.xlu0 %v3099_v29, %s2879_s8 }
 0x224   : > { %1210 = vrot.lane.b32.xlu1 %v3195_v42, %s2876_s29 }
 0x225   : > { %v3370_v6 = vpop.permute.xlu0 %1691 }
 0x226   : > { %v3372_v7 = vpop.permute.xlu1 %1366 }
 0x227   : > { %1214 = vrot.lane.b32.xlu0 %v3363_v3, %s2876_s29 }
 0x228   : > { %2020 = vrot.lane.b32.xlu1 %v3104_v39, %s2879_s8 }
 0x229   : > { %v3380_v12 = vpop.permute.xlu0 %1695 }
 0x22a   : > { %v3382_v13 = vpop.permute.xlu1 %1519 }
 0x22b   : > { %1840 = vrot.lane.b32.xlu0 %v1839_v9, %s2884_s13 }
 0x22c   : > { %2018 = vrot.lane.b32.xlu1 %v3102_v33, %s2879_s8 }
 0x22d   : > { %v3387_v14 = vpop.permute.xlu0 %1848 }
 0x22e   : > { %3994 = vst [vmem:[#allocation6_spill] sm:$0xff] %v3387_v14  ;;  %v3389_v15 = vpop.permute.xlu1 %1844 }
 0x22f   : > { %2028 = vrot.lane.b32.xlu0 %v3133_v22, %s2879_s8 }
 0x230   : > { %2024 = vrot.lane.b32.xlu1 %v3172_v20, %s2879_s8 }
 0x231   : > { %v1197_v17 = vpop.permute.xlu0 %1196 }
 0x232   : > { %v3395_v18 = vpop.permute.xlu1 %1372 }
 0x233   : > { %1386 = vrot.lane.b32.xlu0 %v3195_v42, %s2875_s28 }
 0x234   : > { %2030 = vrot.lane.b32.xlu1 %v3128_v10, %s2879_s8 }
 0x235   : > { %v3401_v19 = vpop.permute.xlu0 %1701 }
 0x236   : > { %v3403_v21 = vpop.permute.xlu1 %1525 }
 0x237   : > { %2026 = vrot.lane.b32.xlu0 %v3131_v16, %s2879_s8 }
 0x238   : > { %1390 = vrot.lane.b32.xlu1 %v3363_v3, %s2875_s28 }
 0x239   : > { %v3409_v23 = vpop.permute.xlu0 %1854 }
 0x23a   : > { %3995 = vst [vmem:[#allocation7_spill] sm:$0xff] %v3409_v23  ;;  %v1193_v24 = vpop.permute.xlu1 %1192  ;;  %v3999_v23 = vmov 0.0  }
 0x23b   : > { %2036 = vrot.lane.b32.xlu0 %v3164_v5, %s2879_s8 }
 0x23c   : > { %2032 = vrot.lane.b32.xlu1 %v3247_v43, %s2879_s8 }
 0x23d   : > { %v3415_v25 = vpop.permute.xlu0 %1368 }
 0x23e   : > { %v3417_v26 = vpop.permute.xlu1 %1697 }
 0x23f   : > { %2034 = vrot.lane.b32.xlu0 %v3162_v63, %s2879_s8 }
 0x240   : > { %2038 = vrot.lane.b32.xlu1 %v3159_v54, %s2879_s8 }
 0x241   : > { %v3423_v27 = vpop.permute.xlu0 %1521 }
 0x242   : > { %v3425_v28 = vpop.permute.xlu1 %1850 }
 0x243   : > { %3996 = vst [vmem:[#allocation8_spill] sm:$0xff] %v3425_v28  ;;  %1539 = vrot.lane.b32.xlu0 %v3195_v42, %s2877_s30 }
 0x244   : > { %2040 = vrot.lane.b32.xlu1 %v3289_v55, %s2879_s8 }
 0x245   : > { %v1199_v30 = vpop.permute.xlu0 %1198 }
 0x246   : > { %v1221_v8 = vsel %vm318_vm8, %v1197_v17, %v1199_v30  ;;  %v1195_v31 = vpop.permute.xlu1 %1194 }
 0x247   : > { %2042 = vrot.lane.b32.xlu0 %v3193_v40, %s2879_s8  ;;  %2726 = vmatpush3.bf16.msra.mxu1 %v1221_v8  ;;  %v1220_v32 = vsel %vm318_vm8, %v1195_v31, %v1197_v17  ;;  %v1219_v34 = vsel %vm318_vm8, %v1193_v24, %v1195_v31 }
 0x248   : > { %1543 = vrot.lane.b32.xlu1 %v3363_v3, %s2877_s30  ;;  %1245 = vmatprep.subr.bf16.mxu0 %v1220_v32 }
 0x249   : > { %1246 = vmatpush1.bf16.msra.mxu0 %v1219_v34  ;;  %v3438_v35 = vpop.permute.xlu0 %1370  ;;  %2727 = vmatprep.subr.bf16.mxu1 %v3980_v45 }
 0x24a   : > { %v3441_v37 = vpop.permute.xlu1 %1374 }
 0x24b   : > { %2173 = vrot.lane.b32.xlu0 %v3104_v39, %s2880_s9 }
 0x24c   : > { %2046 = vrot.lane.b32.xlu1 %v3190_v36, %s2879_s8 }
 0x24d   : > { %v3447_v38 = vpop.permute.xlu0 %1523 }
 0x24e   : > { %v3449_v44 = vpop.permute.xlu1 %1527 }
 0x24f   : > { %2171 = vrot.lane.b32.xlu0 %v3102_v33, %s2880_s9 }
 0x250   : > { %2175 = vrot.lane.b32.xlu1 %v3099_v29, %s2880_s9 }
 0x251   : > { %v3455_v49 = vpop.permute.xlu0 %1703 }
 0x252   : > { %v3457_v56 = vpop.permute.xlu1 %1699 }
 0x253   : > { %2181 = vrot.lane.b32.xlu0 %v3133_v22, %s2880_s9 }
 0x254   : > { %1715 = vrot.lane.b32.xlu1 %v3195_v42, %s2874_s27 }
 0x255   : > { %v3463_v57 = vpop.permute.xlu0 %1856 }
 0x256   : > { %3997 = vst [vmem:[#allocation9_spill] sm:$0xff] %v3463_v57  ;;  %v3465_v58 = vpop.permute.xlu1 %1852 }
 0x257   : > { %3998 = vst [vmem:[#allocation10_spill] sm:$0xff] %v3465_v58  ;;  %1719 = vrot.lane.b32.xlu0 %v3363_v3, %s2874_s27 }
 0x258   : > { %2177 = vrot.lane.b32.xlu1 %v3172_v20, %s2880_s9 }
 0x259   : > { %v1205_v60 = vpop.permute.xlu0 %1204 }
 0x25a   : > { %v3471_v62 = vpop.permute.xlu1 %1380 }
 0x25b   : > { %2179 = vrot.lane.b32.xlu0 %v3131_v16, %s2880_s9 }
 0x25c   : > { %2183 = vrot.lane.b32.xlu1 %v3128_v10, %s2880_s9 }
 0x25d   : > { %v1710_v9 = vpop.permute.xlu0 %1709 }
 0x25e   : > { %v3477_v17 = vpop.permute.xlu1 %1533 }
 0x25f   : > { %2189 = vrot.lane.b32.xlu0 %v3164_v5, %s2880_s9 }
 0x260   : > { %2185 = vrot.lane.b32.xlu1 %v3247_v43, %s2880_s9 }
 0x261   : > { %v1863_v24 = vpop.permute.xlu0 %1862 }
 0x262   : > { %v1201_v30 = vpop.permute.xlu1 %1200 }
 0x263   : > { %2187 = vrot.lane.b32.xlu0 %v3162_v63, %s2880_s9 }
 0x264   : > { %1868 = vrot.lane.b32.xlu1 %v3195_v42, %s2878_s7 }
 0x265   : > { %v3487_v8 = vpop.permute.xlu0 %1376 }
 0x266   : > { %v1706_v31 = vpop.permute.xlu1 %1705 }
 0x267   : > { %1872 = vrot.lane.b32.xlu0 %v3363_v3, %s2878_s7 }
 0x268   : > { %2191 = vrot.lane.b32.xlu1 %v3159_v54, %s2880_s9 }
 0x269   : > { %v3493_v32 = vpop.permute.xlu0 %1529 }
 0x26a   : > { %v1859_v34 = vpop.permute.xlu1 %1858 }
 0x26b   : > { %2195 = vrot.lane.b32.xlu0 %v3193_v40, %s2880_s9 }
 0x26c   : > { %2193 = vrot.lane.b32.xlu1 %v3289_v55, %s2880_s9 }
 0x26d   : > { %v1207_v11 = vpop.permute.xlu0 %1206 }
 0x26e   : > { %v1224_v45 = vsel %vm318_vm8, %v1205_v60, %v1207_v11  ;;  %v1203_v57 = vpop.permute.xlu1 %1202 }
 0x26f   : > { %v1222_v28 = vsel %vm318_vm8, %v1201_v30, %v1203_v57  ;;  %2349 = vrot.lane.b32.xlu0 %v3104_v39, %s2881_s10  ;;  %2728 = vmatpush3.bf16.msra.mxu1 %v1224_v45  ;;  %v1223_v14 = vsel %vm318_vm8, %v1203_v57, %v1205_v60  ;;  %v3520_v45 = vld [vmem:[%s3974_s3 + $0x6] sm:$0x3] }
 0x270   : > { %2199 = vrot.lane.b32.xlu1 %v3190_v36, %s2880_s9  ;;  %1247 = vmatprep.subr.bf16.mxu0 %v1223_v14  ;;  %4000 = vst [vmem:[#allocation11_spill] sm:$0xff] %v3520_v45 }
 0x271   : > { %1248 = vmatpush1.bf16.msra.mxu0 %v1222_v28  ;;  %v3506_v58 = vpop.permute.xlu0 %1378  ;;  %2729 = vmatprep.subr.bf16.mxu1 %v3999_v23 }
 0x272   : > { %v3509_v53 = vpop.permute.xlu1 %1382 }
 0x273   : > { %2044 = vrot.lane.b32.xlu0 %v3195_v42, %s2879_s8 }
 0x274   : > { %2351 = vrot.lane.b32.xlu1 %v3099_v29, %s2881_s10  ;;  %v2168_v29 = vrot.slane %v3520_v45, %v3066_v41 }
 0x275   : > { %v3515_v11 = vpop.permute.xlu0 %1531 }
 0x276   : > { %v1536_v39 = vpop.permute.xlu1 %1535 }
 0x277   : > { %v3524_v14 = vsel %vm399_vm10, %v3477_v17, %v1536_v39  ;;  %2347 = vrot.lane.b32.xlu0 %v3102_v33, %s2881_s10 }
 0x278   : > { %2048 = vrot.lane.b32.xlu1 %v3363_v3, %s2879_s8 }
 0x279   : > { %v1712_v28 = vpop.permute.xlu0 %1711 }
 0x27a   : > { %v3533_v57 = vsel %vm437_vm7, %v1710_v9, %v1712_v28  ;;  %v1708_v60 = vpop.permute.xlu1 %1707 }
 0x27b   : > { %v3536_v30 = vsel %vm437_vm7, %v1706_v31, %v1708_v60  ;;  %2353 = vrot.lane.b32.xlu0 %v3172_v20, %s2881_s10  ;;  %v3541_v39 = vsel %vm437_vm7, %v1708_v60, %v1710_v9 }
 0x27c   : > { %2169 = vrot.lane.b32.xlu1 %v2168_v29, %s2884_s13 }
 0x27d   : > { %v1865_v33 = vpop.permute.xlu0 %1864 }
 0x27e   : > { %v3545_v4 = vsel %vm477_vm11, %v1863_v24, %v1865_v33  ;;  %v1861_v41 = vpop.permute.xlu1 %1860 }
 0x27f   : > { %v3548_v28 = vsel %vm477_vm11, %v1859_v34, %v1861_v41  ;;  %2359 = vrot.lane.b32.xlu0 %v3128_v10, %s2881_s10  ;;  %v3553_v31 = vsel %vm477_vm11, %v1861_v41, %v1863_v24 }
 0x280   : > { %2357 = vrot.lane.b32.xlu1 %v3133_v22, %s2881_s10 }
 0x281   : > { %v1213_v20 = vpop.permute.xlu0 %1212 }
 0x282   : > { %v3557_v9 = vpop.permute.xlu1 %1388 }
 0x283   : > { %2197 = vrot.lane.b32.xlu0 %v3195_v42, %s2880_s9 }
 0x284   : > { %2355 = vrot.lane.b32.xlu1 %v3131_v16, %s2881_s10 }
 0x285   : > { %v3563_v34 = vpop.permute.xlu0 %1717  ;;  %v3585_v60 = vpop.f32.mrb[16].mxu1 }
 0x286   : > { %v3565_v29 = vpop.permute.xlu1 %1541  ;;  %4002 = vst [vmem:[#allocation13_spill] sm:$0xff] %v3585_v60  ;;  %v2721_v33 = vpop.f32.mrb[17].mxu1 }
 0x287   : > { %2361 = vrot.lane.b32.xlu0 %v3247_v43, %s2881_s10 }
 0x288   : > { %2201 = vrot.lane.b32.xlu1 %v3363_v3, %s2880_s9  ;;  %v3583_v43 = vpop.f32.mrb[16].mxu0 }
 0x289   : > { %v3571_v10 = vpop.permute.xlu0 %1870  ;;  %4001 = vst [vmem:[#allocation12_spill] sm:$0xff] %v3583_v43 }
 0x28a   : > { %v1209_v22 = vpop.permute.xlu1 %1208 }
 0x28b   : > { %2367 = vrot.lane.b32.xlu0 %v3159_v54, %s2881_s10  ;;  %v1131_v54 = vpop.f32.mrb[18].mxu1 }
 0x28c   : > { %2365 = vrot.lane.b32.xlu1 %v3164_v5, %s2881_s10  ;;  %v2722_v5 = vpop.f32.mrb[19].mxu1  ;;  %v2490_v54 = vld [vmem:[%s2936_s26] sm:$0xff] }
 0x28d   : > { %v3577_v16 = vpop.permute.xlu0 %1384 }
 0x28e   : > { %v3579_v24 = vpop.permute.xlu1 %1713 }
 0x28f   : > { %2369 = vrot.lane.b32.xlu0 %v3289_v55, %s2881_s10 }
 0x290   : > { %2363 = vrot.lane.b32.xlu1 %v3162_v63, %s2881_s10 }
 0x291   : > { %v3589_v41 = vpop.permute.xlu0 %1537 }
 0x292   : > { %v3591_v45 = vpop.permute.xlu1 %1866 }
 0x293   : > { %2375 = vrot.lane.b32.xlu0 %v3190_v36, %s2881_s10 }
 0x294   : > { %2373 = vrot.lane.b32.xlu1 %v3195_v42, %s2881_s10  ;;  %v1393_v42 = vsel %vm359_vm4, %v3357_v1, %v3319_v47 }
 0x295   : > { %v3597_v55 = vpop.permute.xlu0 %2022 }
 0x296   : > { %v1211_v43 = vpop.permute.xlu1 %1210 }
 0x297   : > { %v1225_v60 = vsel %vm318_vm8, %v1209_v22, %v1211_v43  ;;  %2377 = vrot.lane.b32.xlu0 %v3363_v3, %s2881_s10  ;;  %v1226_v63 = vsel %vm318_vm8, %v1211_v43, %v1213_v20  ;;  %v1035_v22 = vld [vmem:[%s3975_s4] sm:$0xf]  ;;  %v3614_v43 = vpop.f32.mrb[17].mxu0 }
 0x298   : > { %2371 = vrot.lane.b32.xlu1 %v3193_v40, %s2881_s10  ;;  %1249 = vmatprep.subr.bf16.mxu0 %v1226_v63  ;;  %v1392_v40 = vsel %vm359_vm4, %v3333_v51, %v3357_v1  ;;  %v2494_v51 = vcombine.high %v2490_v54, %v2490_v54  ;;  %v4003_v1 = vmov 0  }
 0x299   : > { %1250 = vmatpush1.bf16.msra.mxu0 %v1225_v60  ;;  %v1215_v36 = vpop.permute.xlu0 %1214  ;;  %v1091_v60 = vpop.f32.mrb[18].mxu0 }
 0x29a   : > { %v1227_v33 = vsel %vm318_vm8, %v1213_v20, %v1215_v36  ;;  %v3612_v3 = vpop.permute.xlu1 %2020  ;;  %1419 = vmatprep.subr.bf16.mxu0 %v1393_v42  ;;  %v1396_v20 = vsel %vm359_vm4, %v3438_v35, %v3395_v18  ;;  %v1092_v63 = vpop.f32.mrb[19].mxu0  ;;  %v1394_v36 = vsel %vm359_vm4, %v3319_v47, %v3372_v7  ;;  %v1397_v7 = vsel %vm359_vm4, %v3395_v18, %v3441_v37 }
 0x29b   : > { %2730 = vmatpush3.bf16.msra.mxu1 %v1227_v33  ;;  %2496 = vrot.lane.b32.xlu0 %v2490_v54, %s2881_s10  ;;  %v1545_v54 = vsel %vm399_vm10, %v3331_v50, %v3354_v0  ;;  %v1549_v63 = vsel %vm399_vm10, %v3447_v38, %v3403_v21  ;;  %v1548_v50 = vsel %vm399_vm10, %v3423_v27, %v3447_v38 }
 0x29c   : > { %1136 = vperm.xlu1 %2842, %v1035_v22   ;;  %2629 = vmatmul.mubr.msk.bf16.vlgmr.msra.gmra.mrb[20].mxu0 %vm1049_vm3, %v3303_v61  ;;  %v1395_v22 = vsel %vm359_vm4, %v3415_v25, %v3438_v35  ;;  %v1398_v25 = vsel %vm359_vm4, %v3487_v8, %v3506_v58  ;;  %v1546_v8 = vsel %vm399_vm10, %v3354_v0, %v3311_v2 }
 0x29d   : > { %1420 = vmatpush1.bf16.msra.mxu0 %v1392_v40  ;;  %v3622_v5 = vpop.permute.xlu0 %1840  ;;  %2735 = vmatprep.subr.bf16.mxu1 %v3999_v23  ;;  %v1400_v40 = vsel %vm359_vm4, %v3471_v62, %v3509_v53  ;;  %v1551_v27 = vsel %vm399_vm10, %v3493_v32, %v3515_v11 }
 0x29e   : > { %v3631_v42 = vpop.permute.xlu1 %2018  ;;  %1421 = vmatprep.subr.bf16.mxu0 %v1396_v20  ;;  %2732 = vmatmul.mubr.msk.bf16.vlgmr.msra.gmra.mrb[20].mxu1 %vm1049_vm3, %v3303_v61  ;;  %v1399_v61 = vsel %vm359_vm4, %v3506_v58, %v3471_v62 }
 0x29f   : > { %2736 = vmatpush3.bf16.msra.mxu1 %v1394_v36  ;;  %1451 = vmatprep.mubr.bf16.mxu0 %v4003_v1  ;;  %v1547_v36 = vsel %vm399_vm10, %v3311_v2, %v3382_v13  ;;  %v1550_v13 = vsel %vm399_vm10, %v3403_v21, %v3449_v44  ;;  %v1722_v44 = vsel %vm437_vm7, %v3370_v6, %v3317_v46 }
 0x2a0   : > { %2737 = vmatprep.subr.bf16.mxu1 %v3999_v23  ;;  %2743 = vmatprep.mubr.msk.bf16.mxu1 %vm2886_vm2, %v3999_v23 }
 0x2a1   : > { %1422 = vmatpush1.bf16.msra.mxu0 %v1395_v22  ;;  %v3642_v47 = vpop.permute.xlu0 %2028  ;;  %2498 = vrot.lane.b32.xlu1 %v2494_v51, %s2881_s10  ;;  %v1552_v51 = vsel %vm399_vm10, %v3515_v11, %v3477_v17 }
 0x2a2   : > { %v3651_v33 = vpop.permute.xlu1 %2024  ;;  %1423 = vmatprep.subr.bf16.mxu0 %v1399_v61 }
 0x2a3   : > { %2738 = vmatpush3.bf16.msra.mxu1 %v1397_v7  ;;  %v1725_v7 = vsel %vm437_vm7, %v3457_v56, %v3401_v19 }
 0x2a4   : > { %2739 = vmatprep.subr.bf16.mxu1 %v3999_v23 }
 0x2a5   : > { %1424 = vmatpush1.bf16.msra.mxu0 %v1398_v25  ;;  %v1387_v35 = vpop.permute.xlu0 %1386 }
 0x2a6   : > { %v1401_v18 = vsel %vm359_vm4, %v3577_v16, %v1387_v35  ;;  %v3663_v37 = vpop.permute.xlu1 %2030  ;;  %v1402_v60 = vsel %vm359_vm4, %v1387_v35, %v3557_v9  ;;  %v2864_v16 = vld [vmem:[%s3974_s3 + $0x2] sm:$0x3] }
 0x2a7   : > { %1425 = vmatprep.subr.bf16.mxu0 %v1402_v60  ;;  %2740 = vmatpush3.bf16.msra.mxu1 %v1400_v40  ;;  %v4006_v60 = vld [vmem:[#allocation7_spill] sm:$0xff] }
 0x2a8   : > { %2741 = vmatprep.subr.bf16.mxu1 %v3999_v23 }
 0x2a9   : > { %1426 = vmatpush1.bf16.msra.mxu0 %v1401_v18  ;;  %v3668_v58 = vpop.permute.xlu0 %2026 }
 0x2aa   : > { %v1391_v53 = vpop.permute.xlu1 %1390  ;;  %1572 = vmatprep.subr.bf16.mxu0 %v1546_v8  ;;  %v4007_v8 = vld [vmem:[#allocation10_spill] sm:$0xff] }
 0x2ab   : > { %v1403_v62 = vsel %vm359_vm4, %v3557_v9, %v1391_v53  ;;  %v1878_v53 = vsel %vm477_vm11, %v4007_v8, %v4006_v60 }
 0x2ac   : > { %2631 = vmatmul.mubr.msk.bf16.vlgmr.msra.gmra.mrb[24].mxu0 %vm1049_vm3, %v2864_v16  ;;  %2742 = vmatpush3.bf16.msra.mxu1 %v1403_v62  ;;  %v4008_v62 = vld [vmem:[#allocation6_spill] sm:$0xff] }
 0x2ad   : > { %1573 = vmatpush1.bf16.msra.mxu0 %v1545_v54  ;;  %v3682_v20 = vpop.permute.xlu0 %2036  ;;  %2747 = vmatprep.subr.bf16.mxu1 %v3999_v23 }
 0x2ae   : > { %v3688_v9 = vpop.permute.xlu1 %2032  ;;  %1574 = vmatprep.subr.bf16.mxu0 %v1549_v63  ;;  %1604 = vmatprep.mubr.bf16.mxu0 %v4003_v1 }
 0x2af   : > { %2744 = vmatmul.mubr.msk.bf16.vlgmr.msra.gmra.mrb[24].mxu1 %vm1049_vm3, %v2864_v16  ;;  %v1876_v16 = vsel %vm477_vm11, %v3325_v48, %v4008_v62 }
 0x2b0   : > { %2748 = vmatpush3.bf16.msra.mxu1 %v1547_v36  ;;  %2755 = vmatprep.mubr.msk.bf16.mxu1 %vm2886_vm2, %v3999_v23 }
 0x2b1   : > { %1575 = vmatpush1.bf16.msra.mxu0 %v1548_v50  ;;  %v3700_v0 = vpop.permute.xlu0 %2034  ;;  %2749 = vmatprep.subr.bf16.mxu1 %v3999_v23 }
 0x2b2   : > { %v3706_v2 = vpop.permute.xlu1 %2038  ;;  %1576 = vmatprep.subr.bf16.mxu0 %v1552_v51 }
 0x2b4   : > { %2750 = vmatpush3.bf16.msra.mxu1 %v1550_v13 }
 0x2b5   : > { %1577 = vmatpush1.bf16.msra.mxu0 %v1551_v27  ;;  %v1540_v38 = vpop.permute.xlu0 %1539  ;;  %2751 = vmatprep.subr.bf16.mxu1 %v3999_v23 }
 0x2b6   : > { %v1554_v17 = vsel %vm399_vm10, %v3589_v41, %v1540_v38  ;;  %v3717_v22 = vpop.permute.xlu1 %2040  ;;  %v1555_v61 = vsel %vm399_vm10, %v1540_v38, %v3565_v29 }
 0x2b7   : > { %1578 = vmatprep.subr.bf16.mxu0 %v1555_v61 }
 0x2b8   : > { %2752 = vmatpush3.bf16.msra.mxu1 %v3524_v14  ;;  %v1721_v14 = vsel %vm437_vm7, %v3339_v52, %v3370_v6  ;;  %v1724_v52 = vsel %vm437_vm7, %v3417_v26, %v3457_v56 }
 0x2b9   : > { %1579 = vmatpush1.bf16.msra.mxu0 %v1554_v17  ;;  %v3722_v21 = vpop.permute.xlu0 %2042  ;;  %2753 = vmatprep.subr.bf16.mxu1 %v3999_v23 }
 0x2ba   : > { %v1544_v32 = vpop.permute.xlu1 %1543  ;;  %1748 = vmatprep.subr.bf16.mxu0 %v1722_v44  ;;  %v2054_v44 = vsel %vm515_vm12, %v3642_v47, %v3663_v37 }
 0x2bb   : > { %v1556_v11 = vsel %vm399_vm10, %v3565_v29, %v1544_v32  ;;  %v1723_v29 = vsel %vm437_vm7, %v3317_v46, %v3380_v12 }
 0x2bc   : > { %2633 = vmatmul.mubr.msk.bf16.vlgmr.msra.gmra.mrb[28].mxu0 %vm1049_vm3, %v3301_v59  ;;  %2754 = vmatpush3.bf16.msra.mxu1 %v1556_v11  ;;  %v2057_v11 = vsel %vm515_vm12, %v3682_v20, %v3706_v2 }
 0x2bd   : > { %1749 = vmatpush1.bf16.msra.mxu0 %v1721_v14  ;;  %v3735_v41 = vpop.permute.xlu0 %2173  ;;  %2759 = vmatprep.subr.bf16.mxu1 %v3999_v23 }
 0x2be   : > { %v3741_v25 = vpop.permute.xlu1 %2046  ;;  %1750 = vmatprep.subr.bf16.mxu0 %v1725_v7  ;;  %1780 = vmatprep.mubr.bf16.mxu0 %v4003_v1 }
 0x2bf   : > { %2756 = vmatmul.mubr.msk.bf16.vlgmr.msra.gmra.mrb[28].mxu1 %vm1049_vm3, %v3301_v59  ;;  %v1726_v59 = vsel %vm437_vm7, %v3401_v19, %v3455_v49  ;;  %v1875_v19 = vsel %vm477_vm11, %v3389_v15, %v3325_v48  ;;  %v4010_v48 = vld [vmem:[#allocation9_spill] sm:$0xff] }
 0x2c0   : > { %2760 = vmatpush3.bf16.msra.mxu1 %v1723_v29  ;;  %2767 = vmatprep.mubr.msk.bf16.mxu1 %vm2886_vm2, %v3999_v23  ;;  %v1879_v50 = vsel %vm477_vm11, %v4006_v60, %v4010_v48 }
 0x2c1   : > { %1751 = vmatpush1.bf16.msra.mxu0 %v1724_v52  ;;  %v3754_v6 = vpop.permute.xlu0 %2171  ;;  %2761 = vmatprep.subr.bf16.mxu1 %v3999_v23 }
 0x2c2   : > { %v3757_v35 = vpop.permute.xlu1 %2175  ;;  %1752 = vmatprep.subr.bf16.mxu0 %v3541_v39 }
 0x2c4   : > { %2762 = vmatpush3.bf16.msra.mxu1 %v1726_v59 }
 0x2c5   : > { %1753 = vmatpush1.bf16.msra.mxu0 %v3536_v30  ;;  %v3764_v46 = vpop.permute.xlu0 %2181  ;;  %2763 = vmatprep.subr.bf16.mxu1 %v3999_v23 }
 0x2c6   : > { %v1716_v12 = vpop.permute.xlu1 %1715 }
 0x2c7   : > { %v1730_v26 = vsel %vm437_vm7, %v3579_v24, %v1716_v12  ;;  %v1731_v56 = vsel %vm437_vm7, %v1716_v12, %v3563_v34  ;;  %v4004_v24 = vld [vmem:[#allocation5_spill] sm:$0xff] }
 0x2c8   : > { %1754 = vmatprep.subr.bf16.mxu0 %v1731_v56  ;;  %2764 = vmatpush3.bf16.msra.mxu1 %v3533_v57  ;;  %v4005_v57 = vld [vmem:[#allocation4_spill] sm:$0xff] }
 0x2c9   : > { %1755 = vmatpush1.bf16.msra.mxu0 %v1730_v26  ;;  %v1720_v39 = vpop.permute.xlu0 %1719  ;;  %2765 = vmatprep.subr.bf16.mxu1 %v3999_v23  ;;  %v1874_v40 = vsel %vm477_vm11, %v4005_v57, %v3389_v15  ;;  %v4009_v15 = vld [vmem:[#allocation8_spill] sm:$0xff] }
 0x2ca   : > { %v1732_v49 = vsel %vm437_vm7, %v3563_v34, %v1720_v39  ;;  %v3778_v30 = vpop.permute.xlu1 %2177  ;;  %1901 = vmatprep.subr.bf16.mxu0 %v1875_v19  ;;  %v1877_v54 = vsel %vm477_vm11, %v4009_v15, %v4007_v8 }
 0x2cc   : > { %2635 = vmatmul.mubr.msk.bf16.vlgmr.msra.gmra.mrb[32].mxu0 %vm1049_vm3, %v4004_v24  ;;  %2766 = vmatpush3.bf16.msra.mxu1 %v1732_v49 }
 0x2cd   : > { %1902 = vmatpush1.bf16.msra.mxu0 %v1874_v40  ;;  %v3785_v18 = vpop.permute.xlu0 %2179  ;;  %2771 = vmatprep.subr.bf16.mxu1 %v3999_v23 }
 0x2ce   : > { %v3791_v34 = vpop.permute.xlu1 %2183  ;;  %1903 = vmatprep.subr.bf16.mxu0 %v1878_v53  ;;  %1933 = vmatprep.mubr.bf16.mxu0 %v4003_v1  ;;  %v2206_v12 = vsel %vm555_vm13, %v3785_v18, %v3764_v46 }
 0x2cf   : > { %2768 = vmatmul.mubr.msk.bf16.vlgmr.msra.gmra.mrb[32].mxu1 %vm1049_vm3, %v4004_v24  ;;  %v2207_v52 = vsel %vm555_vm13, %v3764_v46, %v3791_v34 }
 0x2d0   : > { %2772 = vmatpush3.bf16.msra.mxu1 %v1876_v16  ;;  %2779 = vmatprep.mubr.msk.bf16.mxu1 %vm2886_vm2, %v3999_v23 }
 0x2d1   : > { %1904 = vmatpush1.bf16.msra.mxu0 %v1877_v54  ;;  %v3804_v63 = vpop.permute.xlu0 %2189  ;;  %2773 = vmatprep.subr.bf16.mxu1 %v3999_v23 }
 0x2d2   : > { %v3807_v36 = vpop.permute.xlu1 %2185  ;;  %1905 = vmatprep.subr.bf16.mxu0 %v3553_v31 }
 0x2d3   : > { %v2208_v46 = vsel %vm555_vm13, %v3791_v34, %v3807_v36 }
 0x2d4   : > { %2774 = vmatpush3.bf16.msra.mxu1 %v1879_v50 }
 0x2d5   : > { %1906 = vmatpush1.bf16.msra.mxu0 %v3548_v28  ;;  %v3814_v51 = vpop.permute.xlu0 %2187  ;;  %2775 = vmatprep.subr.bf16.mxu1 %v3999_v23  ;;  %v2051_v28 = vsel %vm515_vm12, %v3612_v3, %v3597_v55 }
 0x2d6   : > { %v1869_v13 = vpop.permute.xlu1 %1868  ;;  %v2209_v39 = vsel %vm555_vm13, %v3814_v51, %v3804_v63 }
 0x2d7   : > { %v1883_v27 = vsel %vm477_vm11, %v3591_v45, %v1869_v13  ;;  %v1884_v38 = vsel %vm477_vm11, %v1869_v13, %v3571_v10  ;;  %v2050_v45 = vsel %vm515_vm12, %v3631_v42, %v3612_v3  ;;  %v2052_v3 = vsel %vm515_vm12, %v3597_v55, %v3651_v33 }
 0x2d8   : > { %1907 = vmatprep.subr.bf16.mxu0 %v1884_v38  ;;  %2776 = vmatpush3.bf16.msra.mxu1 %v3545_v4  ;;  %v2053_v42 = vsel %vm515_vm12, %v3668_v58, %v3642_v47  ;;  %v2056_v47 = vsel %vm515_vm12, %v3700_v0, %v3682_v20 }
 0x2d9   : > { %1908 = vmatpush1.bf16.msra.mxu0 %v1883_v27  ;;  %v1873_v31 = vpop.permute.xlu0 %1872  ;;  %2777 = vmatprep.subr.bf16.mxu1 %v3999_v23 }
 0x2da   : > { %v1885_v17 = vsel %vm477_vm11, %v3571_v10, %v1873_v31  ;;  %v3828_v61 = vpop.permute.xlu1 %2191  ;;  %2077 = vmatprep.subr.bf16.mxu0 %v2051_v28 }
 0x2dc   : > { %2637 = vmatmul.mubr.msk.bf16.vlgmr.msra.gmra.mrb[36].mxu0 %vm1049_vm3, %v3622_v5  ;;  %2778 = vmatpush3.bf16.msra.mxu1 %v1885_v17 }
 0x2dd   : > { %2078 = vmatpush1.bf16.msra.mxu0 %v2050_v45  ;;  %v3835_v4 = vpop.permute.xlu0 %2195  ;;  %2783 = vmatprep.subr.bf16.mxu1 %v3999_v23  ;;  %v2314_v45 = vld [vmem:[%s3974_s3 + $0x8] sm:$0x3] }
 0x2de   : > { %v3841_v10 = vpop.permute.xlu1 %2193  ;;  %2079 = vmatprep.subr.bf16.mxu0 %v2054_v44  ;;  %2109 = vmatprep.mubr.bf16.mxu0 %v4003_v1  ;;  %v4012_v44 = vld [vmem:[#allocation12_spill] sm:$0xff] }
 0x2df   : > { %2780 = vmatmul.mubr.msk.bf16.vlgmr.msra.gmra.mrb[36].mxu1 %vm1049_vm3, %v3622_v5  ;;  %v2055_v5 = vsel %vm515_vm12, %v3663_v37, %v3688_v9  ;;  %v2058_v37 = vsel %vm515_vm12, %v3706_v2, %v3717_v22  ;;  %v2204_v9 = vsel %vm555_vm13, %v3735_v41, %v3757_v35  ;;  %v2203_v2 = vsel %vm555_vm13, %v3754_v6, %v3735_v41  ;;  %v4011_v22 = vld [vmem:[#allocation11_spill] sm:$0xff] }
 0x2e0   : > { %2784 = vmatpush3.bf16.msra.mxu1 %v2052_v3  ;;  %2791 = vmatprep.mubr.msk.bf16.mxu1 %vm2886_vm2, %v3999_v23  ;;  %v2205_v41 = vsel %vm555_vm13, %v3757_v35, %v3778_v30  ;;  %v2210_v35 = vsel %vm555_vm13, %v3804_v63, %v3828_v61  ;;  %v2211_v57 = vsel %vm555_vm13, %v3828_v61, %v3841_v10 }
 0x2e1   : > { %2080 = vmatpush1.bf16.msra.mxu0 %v2053_v42  ;;  %v3854_v32 = vpop.permute.xlu0 %2349  ;;  %2785 = vmatprep.subr.bf16.mxu1 %v3999_v23 }
 0x2e2   : > { %v3860_v55 = vpop.permute.xlu1 %2199  ;;  %2081 = vmatprep.subr.bf16.mxu0 %v2057_v11  ;;  %v4013_v11 = vld [vmem:[#allocation13_spill] sm:$0xff] }
 0x2e4   : > { %2786 = vmatpush3.bf16.msra.mxu1 %v2055_v5 }
 0x2e5   : > { %2082 = vmatpush1.bf16.msra.mxu0 %v2056_v47  ;;  %v2045_v33 = vpop.permute.xlu0 %2044  ;;  %2787 = vmatprep.subr.bf16.mxu1 %v3999_v23 }
 0x2e6   : > { %v2059_v58 = vsel %vm515_vm12, %v3722_v21, %v2045_v33  ;;  %v3871_v14 = vpop.permute.xlu1 %2351  ;;  %v2060_v7 = vsel %vm515_vm12, %v2045_v33, %v3741_v25 }
 0x2e7   : > { %2083 = vmatprep.subr.bf16.mxu0 %v2060_v7  ;;  %v2380_v18 = vsel %vm593_vm14, %v3854_v32, %v3871_v14 }
 0x2e8   : > { %2788 = vmatpush3.bf16.msra.mxu1 %v2058_v37 }
 0x2e9   : > { %2084 = vmatpush1.bf16.msra.mxu0 %v2059_v58  ;;  %v2348_v20 = vpop.permute.xlu0 %2347  ;;  %2789 = vmatprep.subr.bf16.mxu1 %v3999_v23 }
 0x2ea   : > { %v2049_v0 = vpop.permute.xlu1 %2048  ;;  %2230 = vmatprep.subr.bf16.mxu0 %v2204_v9  ;;  %v2379_v53 = vsel %vm593_vm14, %v2348_v20, %v3854_v32 }
 0x2eb   : > { %v2061_v21 = vsel %vm515_vm12, %v3741_v25, %v2049_v0  ;;  %v2491_v25 = vld [vmem:[%s2936_s26 + $0x8] sm:$0xff] }
 0x2ec   : > { %2639 = vmatmul.mubr.msk.bf16.vlgmr.msra.gmra.mrb[40].mxu0 %vm1049_vm3, %v4011_v22  ;;  %2790 = vmatpush3.bf16.msra.mxu1 %v2061_v21  ;;  %v2495_v6 = vcombine.high %v2491_v25, %v2491_v25 }
 0x2ed   : > { %2231 = vmatpush1.bf16.msra.mxu0 %v2203_v2  ;;  %v2354_v29 = vpop.permute.xlu0 %2353  ;;  %2795 = vmatprep.subr.bf16.mxu1 %v3999_v23 }
 0x2ee   : > { %v2170_v59 = vpop.permute.xlu1 %2169  ;;  %2232 = vmatprep.subr.bf16.mxu0 %v2207_v52  ;;  %2262 = vmatprep.mubr.bf16.mxu0 %v4003_v1  ;;  %v2381_v15 = vsel %vm593_vm14, %v3871_v14, %v2354_v29 }
 0x2ef   : > { %2792 = vmatmul.mubr.msk.bf16.vlgmr.msra.gmra.mrb[40].mxu1 %vm1049_vm3, %v4011_v22  ;;  %2500 = vrot.lane.b32.xlu0 %v2491_v25, %s2881_s10 }
 0x2f0   : > { %2796 = vmatpush3.bf16.msra.mxu1 %v2205_v41  ;;  %2803 = vmatprep.mubr.msk.bf16.mxu1 %vm2886_vm2, %v3999_v23 }
 0x2f1   : > { %2233 = vmatpush1.bf16.msra.mxu0 %v2206_v12  ;;  %v2360_v26 = vpop.permute.xlu0 %2359  ;;  %2797 = vmatprep.subr.bf16.mxu1 %v3999_v23 }
 0x2f2   : > { %v2358_v56 = vpop.permute.xlu1 %2357  ;;  %2234 = vmatprep.subr.bf16.mxu0 %v2210_v35  ;;  %2502 = vrot.lane.b32.xlu1 %v2495_v6, %s2881_s10  ;;  %s2819_s10 = smul.u32 12, %s4015_s22 }
 0x2f3   : > { %v2383_v62 = vsel %vm593_vm14, %v2358_v56, %v2360_v26 }
 0x2f4   : > { %2798 = vmatpush3.bf16.msra.mxu1 %v2208_v46  ;;  %s251_s20 = scalar_lea.vmem %s3977_s6, %s2819_s10 }
 0x2f5   : > { %2235 = vmatpush1.bf16.msra.mxu0 %v2209_v39  ;;  %v2198_v19 = vpop.permute.xlu0 %2197  ;;  %2799 = vmatprep.subr.bf16.mxu1 %v3999_v23 }
 0x2f6   : > { %v2212_v49 = vsel %vm555_vm13, %v3835_v4, %v2198_v19  ;;  %v2356_v30 = vpop.permute.xlu1 %2355  ;;  %v2213_v24 = vsel %vm555_vm13, %v2198_v19, %v3860_v55 }
 0x2f7   : > { %2236 = vmatprep.subr.bf16.mxu0 %v2213_v24  ;;  %v2382_v54 = vsel %vm593_vm14, %v2356_v30, %v2358_v56 }
 0x2f8   : > { %2800 = vmatpush3.bf16.msra.mxu1 %v2211_v57 }
 0x2f9   : > { %2237 = vmatpush1.bf16.msra.mxu0 %v2212_v49  ;;  %v2362_v40 = vpop.permute.xlu0 %2361  ;;  %2801 = vmatprep.subr.bf16.mxu1 %v3999_v23 }
 0x2fa   : > { %v2202_v60 = vpop.permute.xlu1 %2201  ;;  %2406 = vmatprep.subr.bf16.mxu0 %v2380_v18 }
 0x2fb   : > { %v2214_v8 = vsel %vm555_vm13, %v3860_v55, %v2202_v60 }
 0x2fc   : > { %2641 = vmatmul.mubr.msk.bf16.vlgmr.msra.gmra.mrb[44].mxu0 %vm1049_vm3, %v2170_v59  ;;  %2802 = vmatpush3.bf16.msra.mxu1 %v2214_v8 }
 0x2fd   : > { %2407 = vmatpush1.bf16.msra.mxu0 %v2379_v53  ;;  %v2368_v34 = vpop.permute.xlu0 %2367  ;;  %2807 = vmatprep.subr.bf16.mxu1 %v3999_v23 }
 0x2fe   : > { %v2366_v16 = vpop.permute.xlu1 %2365  ;;  %2408 = vmatprep.subr.bf16.mxu0 %v2383_v62  ;;  %2438 = vmatprep.mubr.bf16.mxu0 %v4003_v1  ;;  %v2384_v1 = vsel %vm593_vm14, %v2360_v26, %v2362_v40 }
 0x2ff   : > { %2804 = vmatmul.mubr.msk.bf16.vlgmr.msra.gmra.mrb[44].mxu1 %vm1049_vm3, %v2170_v59  ;;  %v2386_v36 = vsel %vm593_vm14, %v2366_v16, %v2368_v34 }
 0x300   : > { %2808 = vmatpush3.bf16.msra.mxu1 %v2381_v15  ;;  %2815 = vmatprep.mubr.msk.bf16.mxu1 %vm2886_vm2, %v3999_v23 }
 0x301   : > { %2409 = vmatpush1.bf16.msra.mxu0 %v2382_v54  ;;  %v2370_v63 = vpop.permute.xlu0 %2369  ;;  %2809 = vmatprep.subr.bf16.mxu1 %v3999_v23 }
 0x302   : > { %v2364_v48 = vpop.permute.xlu1 %2363  ;;  %2410 = vmatprep.subr.bf16.mxu0 %v2386_v36  ;;  %v2387_v27 = vsel %vm593_vm14, %v2368_v34, %v2370_v63 }
 0x303   : > { %v2385_v50 = vsel %vm593_vm14, %v2364_v48, %v2366_v16 }
 0x304   : > { %2810 = vmatpush3.bf16.msra.mxu1 %v2384_v1 }
 0x305   : > { %2411 = vmatpush1.bf16.msra.mxu0 %v2385_v50  ;;  %v2376_v51 = vpop.permute.xlu0 %2375  ;;  %2811 = vmatprep.subr.bf16.mxu1 %v3999_v23 }
 0x306   : > { %v2374_v13 = vpop.permute.xlu1 %2373 }
 0x307   : > { %v2389_v38 = vsel %vm593_vm14, %v2374_v13, %v2376_v51 }
 0x308   : > { %2412 = vmatprep.subr.bf16.mxu0 %v2389_v38  ;;  %2812 = vmatpush3.bf16.msra.mxu1 %v2387_v27 }
 0x309   : > { %v2378_v31 = vpop.permute.xlu0 %2377  ;;  %2813 = vmatprep.subr.bf16.mxu1 %v3999_v23 }
 0x30a   : > { %v2390_v28 = vsel %vm593_vm14, %v2376_v51, %v2378_v31  ;;  %v2372_v17 = vpop.permute.xlu1 %2371 }
 0x30b   : > { %v2388_v61 = vsel %vm593_vm14, %v2372_v17, %v2374_v13 }
 0x30c   : > { %2413 = vmatpush1.bf16.msra.mxu0 %v2388_v61  ;;  %2814 = vmatpush3.bf16.msra.mxu1 %v2390_v28 }
 0x30f   : > { %2643 = vmatmul.mubr.msk.bf16.vlgmr.msra.gmra.mrb[48].mxu0 %vm1049_vm3, %v2314_v45  ;;  %2816 = vmatmul.mubr.msk.bf16.vlgmr.msra.gmra.mrb[48].mxu1 %vm1049_vm3, %v2314_v45 }
 0x31b   : > { %v1137_v4 = vpop.permute.xlu1 %1136 }
 0x31c   : > { %v1139_v10 = vadd.f32 %v1137_v4, %v4012_v44  ;;  %v1140_v23 = vadd.f32 %v1137_v4, %v3614_v43  ;;  %v1141_v55 = vadd.f32 %v1137_v4, %v4013_v11 }
 0x36f   : > { %v1277_v3 = vpop.f32.mrb[20].mxu0 }
 0x370   : > { %v1324_v42 = vadd.f32 %v1277_v3, %v1139_v10  ;;  %v1279_v32 = vpop.f32.mrb[21].mxu0 }
 0x371   : > { %v1325_v5 = vadd.f32 %v1279_v32, %v1140_v23  ;;  %v1281_v47 = vpop.f32.mrb[22].mxu0  ;;  %v1318_v33 = vpop.f32.mrb[20].mxu1 }
 0x372   : > { %v1282_v58 = vpop.f32.mrb[23].mxu0  ;;  %v1326_v14 = vadd.f32 %v1318_v33, %v1141_v55  ;;  %v2733_v7 = vpop.f32.mrb[21].mxu1 }
 0x373   : > { %v1321_v37 = vpop.f32.mrb[22].mxu1 }
 0x374   : > { %v2734_v20 = vpop.f32.mrb[23].mxu1 }
 0x37f   : > { %v1453_v9 = vpop.f32.mrb[24].mxu0 }
 0x380   : > { %v1500_v0 = vadd.f32 %v1453_v9, %v1324_v42  ;;  %v1455_v21 = vpop.f32.mrb[25].mxu0 }
 0x381   : > { %v1501_v2 = vadd.f32 %v1455_v21, %v1325_v5  ;;  %v1457_v22 = vpop.f32.mrb[26].mxu0  ;;  %v2497_v21 = vpop.permute.xlu0 %2496 }
 0x382   : > { %v1494_v29 = vpop.f32.mrb[24].mxu1  ;;  %v1458_v43 = vpop.f32.mrb[27].mxu0 }
 0x383   : > { %v1502_v52 = vadd.f32 %v1494_v29, %v1326_v14  ;;  %v2745_v59 = vpop.f32.mrb[25].mxu1 }
 0x384   : > { %v1497_v25 = vpop.f32.mrb[26].mxu1 }
 0x385   : > { %v2746_v41 = vpop.f32.mrb[27].mxu1  ;;  %v2501_v22 = vpop.permute.xlu0 %2500 }
 0x38f   : > { %v1606_v6 = vpop.f32.mrb[28].mxu0 }
 0x390   : > { %v1653_v12 = vadd.f32 %v1606_v6, %v1500_v0  ;;  %v1608_v26 = vpop.f32.mrb[29].mxu0 }
 0x391   : > { %v1654_v35 = vadd.f32 %v1608_v26, %v1501_v2  ;;  %v1610_v56 = vpop.f32.mrb[30].mxu0  ;;  %v2499_v2 = vpop.permute.xlu1 %2498 }
 0x392   : > { %v1611_v46 = vpop.f32.mrb[31].mxu0  ;;  %v1647_v39 = vpop.f32.mrb[28].mxu1  ;;  %v2505_v26 = vsel %vm593_vm14, %v2497_v21, %v2499_v2 }
 0x393   : > { %v1655_v19 = vadd.f32 %v1647_v39, %v1502_v52  ;;  %v2757_v49 = vpop.f32.mrb[29].mxu1  ;;  %v2506_v39 = vsel %vm593_vm14, %v2499_v2, %v2501_v22 }
 0x394   : > { %v1650_v30 = vpop.f32.mrb[30].mxu1 }
 0x395   : > { %v2758_v24 = vpop.f32.mrb[31].mxu1  ;;  %v2503_v29 = vpop.permute.xlu1 %2502 }
 0x396   : > { %v2507_v59 = vsel %vm593_vm14, %v2501_v22, %v2503_v29 }
 0x39f   : > { %v1782_v57 = vpop.f32.mrb[32].mxu0 }
 0x3a0   : > { %v1829_v40 = vadd.f32 %v1782_v57, %v1653_v12  ;;  %v1784_v18 = vpop.f32.mrb[33].mxu0 }
 0x3a1   : > { %v1830_v60 = vadd.f32 %v1784_v18, %v1654_v35  ;;  %v1786_v8 = vpop.f32.mrb[34].mxu0 }
 0x3a2   : > { %v1823_v53 = vpop.f32.mrb[32].mxu1  ;;  %v1787_v34 = vpop.f32.mrb[35].mxu0 }
 0x3a3   : > { %v1831_v62 = vadd.f32 %v1823_v53, %v1655_v19  ;;  %v2769_v16 = vpop.f32.mrb[33].mxu1 }
 0x3a4   : > { %v1826_v15 = vpop.f32.mrb[34].mxu1 }
 0x3a5   : > { %v2770_v54 = vpop.f32.mrb[35].mxu1 }
 0x3af   : > { %v1935_v63 = vpop.f32.mrb[36].mxu0 }
 0x3b0   : > { %v1982_v36 = vadd.f32 %v1935_v63, %v1829_v40  ;;  %v1937_v48 = vpop.f32.mrb[37].mxu0 }
 0x3b1   : > { %v1983_v1 = vadd.f32 %v1937_v48, %v1830_v60  ;;  %v1939_v50 = vpop.f32.mrb[38].mxu0 }
 0x3b2   : > { %v1940_v51 = vpop.f32.mrb[39].mxu0  ;;  %v1976_v13 = vpop.f32.mrb[36].mxu1 }
 0x3b3   : > { %v1984_v27 = vadd.f32 %v1976_v13, %v1831_v62  ;;  %v2781_v38 = vpop.f32.mrb[37].mxu1 }
 0x3b4   : > { %v1979_v31 = vpop.f32.mrb[38].mxu1 }
 0x3b5   : > { %v2782_v28 = vpop.f32.mrb[39].mxu1 }
 0x3bf   : > { %v2111_v17 = vpop.f32.mrb[40].mxu0 }
 0x3c0   : > { %v2158_v61 = vadd.f32 %v2111_v17, %v1982_v36  ;;  %v2113_v45 = vpop.f32.mrb[41].mxu0 }
 0x3c1   : > { %v2159_v4 = vadd.f32 %v2113_v45, %v1983_v1  ;;  %v2115_v44 = vpop.f32.mrb[42].mxu0 }
 0x3c2   : > { %v2152_v10 = vpop.f32.mrb[40].mxu1  ;;  %v2116_v23 = vpop.f32.mrb[43].mxu0 }
 0x3c3   : > { %v2160_v3 = vadd.f32 %v2152_v10, %v1984_v27  ;;  %v2793_v42 = vpop.f32.mrb[41].mxu1 }
 0x3c4   : > { %v2155_v32 = vpop.f32.mrb[42].mxu1 }
 0x3c5   : > { %v2794_v11 = vpop.f32.mrb[43].mxu1 }
 0x3cf   : > { %v2264_v55 = vpop.f32.mrb[44].mxu0 }
 0x3d0   : > { %v2311_v5 = vadd.f32 %v2264_v55, %v2158_v61  ;;  %v2266_v47 = vpop.f32.mrb[45].mxu0 }
 0x3d1   : > { %v2312_v33 = vadd.f32 %v2266_v47, %v2159_v4  ;;  %v2268_v58 = vpop.f32.mrb[46].mxu0 }
 0x3d2   : > { %v2269_v14 = vpop.f32.mrb[47].mxu0  ;;  %v2305_v7 = vpop.f32.mrb[44].mxu1 }
 0x3d3   : > { %v2313_v37 = vadd.f32 %v2305_v7, %v2160_v3  ;;  %v2805_v20 = vpop.f32.mrb[45].mxu1 }
 0x3d4   : > { %v2308_v9 = vpop.f32.mrb[46].mxu1 }
 0x3d5   : > { %v2806_v0 = vpop.f32.mrb[47].mxu1 }
 0x3e2   : > { %v2440_v43 = vpop.f32.mrb[48].mxu0  ;;  %v2481_v52 = vpop.f32.mrb[48].mxu1 }
 0x3e3   : > { %v2487_v25 = vadd.f32 %v2440_v43, %v2311_v5  ;;  %v2489_v41 = vadd.f32 %v2481_v52, %v2313_v37  ;;  %v2817_v6 = vpop.f32.mrb[49].mxu1  ;;  %v2442_v12 = vpop.f32.mrb[49].mxu0 }
 0x3e4   : > { %v2488_v35 = vadd.f32 %v2442_v12, %v2312_v33  ;;  %v2444_v56 = vpop.f32.mrb[50].mxu0  ;;  %v2484_v46 = vpop.f32.mrb[50].mxu1 }
 0x3e5   : > { %v2511_v19 = vadd.f32 %v2505_v26, %v2487_v25  ;;  %v2513_v49 = vadd.f32 %v2507_v59, %v2489_v41  ;;  %v2445_v30 = vpop.f32.mrb[51].mxu0  ;;  %v2818_v24 = vpop.f32.mrb[51].mxu1 }
 0x3e6   : > { %v2512_v57 = vadd.f32 %v2506_v39, %v2488_v35 }
 0x3e7   : > { %2519 = vst [vmem:[%s251_s20 + $0x8] sm:$0xf] %v2513_v49 }
 0x3e8   : > { %v2516_v40 = vcombine.low %v2511_v19, %v2512_v57 }
 0x3ea   : > { %2518 = vst [vmem:[%s251_s20] sm:$0xff] %v2516_v40 }
 0x3eb PF: > { %s16_s21 = sadd.s32 1, %s2872_s21  }
 0x3ec   : > { %p13_p4 = scmp.ge.s32.totalorder %s16_s21, 4  }
 0x3ee   :  { %15 = sbr.rel (!%p13_p4) target bundleno = 1 (0x1), region = 74 }

</bundles_post_ra>
